<compile_context>
chip_gen: v7x
topology: tpu7x:2x2x1
jax: 0.10.0
libtpu: 0.0.40
codegen_flags: <defaults>
</compile_context>

<pallas_src>
import numpy as np
import jax
import jax.numpy as jnp
from jax.experimental import pallas as pl
from jax.experimental.pallas import tpu as pltpu

# ---- config (mirrors the PyTorch `config` object, small synthetic sizes) ----
INPUT_SIZE = 16
HIDDEN_SIZE = 32
NUM_LAYERS = 2
NUM_CLASSES = 10
SEQ_LEN = 8
BATCH = 2


def _vmem_spec():
    return pl.BlockSpec(memory_space=pltpu.MemorySpace.VMEM)


# --------------------------- fused Pallas kernel -----------------------------
def make_fused_rnn_kernel(T, Bp, D, H, L, offsets):
    """One kernel = all LSTM layers + final Linear.

    Inputs (all VMEM-resident, no grid):
      x2d    (T*Bp, D)   bf16   time-major, batch padded to Bp
      w_pack (rows, 4H)  bf16   [w_ih_l | w_hh_l ... | fc_w]  (row offsets static)
      b_pack (L+1, 4H)   f32    fused per-layer biases; last row = fc_b
    Output:
      out    (Bp, 4H)    f32    logits in the first NUM_CLASSES lanes
    """
    F32 = jnp.float32

    def kernel(x_ref, w_ref, b_ref, out_ref):
        # ---- hoisted parameter loads (bf16 weights, f32 fused biases) ----
        wih, whh, bias = [], [], []
        for l in range(L):
            din = D if l == 0 else H
            o = offsets["w_ih"][l]
            wih.append(w_ref[o:o + din, :])          # (Din, 4H) bf16
            o = offsets["w_hh"][l]
            whh.append(w_ref[o:o + H, :])            # (H, 4H)   bf16
            bias.append(b_ref[l:l + 1, :])           # (1, 4H)   f32
        fo = offsets["fc_w"]
        fc_w = w_ref[fo:fo + H, :]                   # (H, 4H) bf16 (lane-padded)
        fc_b = b_ref[L:L + 1, :]                     # (1, 4H) f32  (lane-padded)

        # ---- layer-0 input projection hoisted over the whole sequence ----
        # one (T*Bp, D) @ (D, 4H) matmul instead of T small ones on the chain.
        gx0 = jnp.dot(x_ref[...], wih[0],
                      preferred_element_type=F32) + bias[0]        # (T*Bp, 4H)

        # ---- wavefront recurrence -----------------------------------------
        # Macro-step s runs time step t = s - l for every live layer l, so the
        # serial chain is T + L - 1 macro-steps.  Layers are visited top-down
        # inside a macro-step so layer l reads feed[l] (h of layer l-1 at the
        # same time step, produced during the previous macro-step) before
        # layer l-1 overwrites it.
        h = [jnp.zeros((Bp, H), jnp.bfloat16) for _ in range(L)]
        c = [jnp.zeros((Bp, H), F32) for _ in range(L)]
        feed = [None] * L
        for s in range(T + L - 1):
            for l in range(L - 1, -1, -1):
                t = s - l
                if t < 0 or t >= T:
                    continue
                if l == 0:
                    gin = gx0[t * Bp:(t + 1) * Bp, :]       # aligned (Bp,4H) pick
                else:
                    gin = (jnp.dot(feed[l], wih[l],
                                   preferred_element_type=F32) + bias[l])
                g = gin + jnp.dot(h[l], whh[l],
                                  preferred_element_type=F32)       # (Bp, 4H)
                sg = jax.nn.sigmoid(g)          # one full-width EUP pass (i,f,o)
                tg = jnp.tanh(g)                # one full-width EUP pass (g)
                i_g = sg[:, 0 * H:1 * H]
                f_g = sg[:, 1 * H:2 * H]
                o_g = sg[:, 3 * H:4 * H]
                g_g = tg[:, 2 * H:3 * H]
                c[l] = f_g * c[l] + i_g * g_g                       # f32 cell
                h[l] = (o_g * jnp.tanh(c[l])).astype(jnp.bfloat16)  # bf16 h
                if l + 1 < L:
                    feed[l + 1] = h[l]

        # ---- final linear layer on the last hidden state of the top layer ---
        out_ref[...] = (jnp.dot(h[L - 1], fc_w,
                                preferred_element_type=F32) + fc_b)

    return kernel


# ------------------------------ wrappers --------------------------------------
def prepare_params(params):
    """One-time layout prep (kept off the per-call path):
       - transpose weights, cast to bf16, lane-pad fc_w to 4H lanes,
       - pack every weight into ONE (rows, 4H) bf16 array (row offsets are
         multiples of 16 = bf16 sublane tile),
       - fuse b_ih+b_hh per layer and pack all biases + lane-padded fc_b into
         ONE (L+1, 4H) f32 array."""
    L = len(params["lstm"])
    H = params["lstm"][0][1].shape[1]
    C = params["fc_w"].shape[0]
    GW = 4 * H
    assert C <= GW, "num_classes must fit in the 4H lane width"

    blocks = []
    offsets = {"w_ih": [], "w_hh": [], "fc_w": 0}
    row = 0

    def push(mat):
        nonlocal row
        r = int(mat.shape[0])
        pad = (-r) % 16                      # bf16 sublane tile = 16 rows
        if pad:
            mat = jnp.concatenate(
                [mat, jnp.zeros((pad, mat.shape[1]), mat.dtype)], axis=0)
        blocks.append(mat.astype(jnp.bfloat16))
        off = row
        row += r + pad
        return off

    bias_rows = []
    for (w_ih, w_hh, b_ih, b_hh) in params["lstm"]:
        offsets["w_ih"].append(push(w_ih.T))                 # (Din, 4H)
        offsets["w_hh"].append(push(w_hh.T))                 # (H, 4H)
        bias_rows.append((b_ih + b_hh).reshape(1, GW))       # (1, 4H)
    fc_w = jnp.pad(params["fc_w"].T, ((0, 0), (0, GW - C)))  # (H, 4H)
    offsets["fc_w"] = push(fc_w)
    bias_rows.append(jnp.pad(params["fc_b"].reshape(1, C), ((0, 0), (0, GW - C))))

    return {
        "w_pack": jnp.concatenate(blocks, axis=0),                       # bf16
        "b_pack": jnp.concatenate(bias_rows, axis=0).astype(jnp.float32),  # f32
        "offsets": offsets, "L": L, "H": H, "C": C,
    }


def build_forward(prep, T, B, D):
    """Builds the fused pallas_call once; returns a jitted forward(x, w, b)."""
    H, C, L = prep["H"], prep["C"], prep["L"]
    Bp = ((B + 7) // 8) * 8                      # sublane-pad the batch
    kernel = make_fused_rnn_kernel(T, Bp, D, H, L, prep["offsets"])

    call = pl.pallas_call(
        kernel,
        out_shape=jax.ShapeDtypeStruct((Bp, 4 * H), jnp.float32),
        in_specs=[_vmem_spec()] * 3,
        out_specs=_vmem_spec(),
    )

    @jax.jit
    def fwd(x, w_pack, b_pack):
        # batch_first (B,T,D) -> time-major, batch padded to Bp, flattened 2-D,
        # cast to bf16 for the MXU (fused with the kernel call under jit).
        xt = jnp.transpose(x.astype(jnp.float32), (1, 0, 2))      # (T, B, D)
        xt = jnp.pad(xt, ((0, 0), (0, Bp - B), (0, 0)))           # (T, Bp, D)
        x2d = xt.reshape(T * Bp, D).astype(jnp.bfloat16)
        out = call(x2d, w_pack, b_pack)                           # (Bp, 4H) f32
        return out[:B, :C]

    return fwd


# ----------------------- deterministic parameter init ------------------------
def init_params(key):
    params = {"lstm": []}
    bound = float(1.0 / np.sqrt(HIDDEN_SIZE))   # PyTorch default uniform bound
    k = key
    for layer in range(NUM_LAYERS):
        in_dim = INPUT_SIZE if layer == 0 else HIDDEN_SIZE
        k, k1, k2, k3, k4 = jax.random.split(k, 5)
        w_ih = jax.random.uniform(k1, (4 * HIDDEN_SIZE, in_dim), jnp.float32, -bound, bound)
        w_hh = jax.random.uniform(k2, (4 * HIDDEN_SIZE, HIDDEN_SIZE), jnp.float32, -bound, bound)
        b_ih = jax.random.uniform(k3, (4 * HIDDEN_SIZE,), jnp.float32, -bound, bound)
        b_hh = jax.random.uniform(k4, (4 * HIDDEN_SIZE,), jnp.float32, -bound, bound)
        params["lstm"].append((w_ih, w_hh, b_ih, b_hh))
    k, k1, k2 = jax.random.split(k, 3)
    params["fc_w"] = jax.random.uniform(k1, (NUM_CLASSES, HIDDEN_SIZE), jnp.float32, -bound, bound)
    params["fc_b"] = jax.random.uniform(k2, (NUM_CLASSES,), jnp.float32, -bound, bound)
    return params


# ------------------------- pure-JAX reference (check) ------------------------
def rnn_forward_ref(x, params):
    h_seq = x.astype(jnp.float32)
    B = x.shape[0]
    for (w_ih, w_hh, b_ih, b_hh) in params["lstm"]:
        H = w_hh.shape[1]
        h = jnp.zeros((B, H), jnp.float32)
        c = jnp.zeros((B, H), jnp.float32)
        outs = []
        for t in range(h_seq.shape[1]):
            gates = h_seq[:, t, :] @ w_ih.T + h @ w_hh.T + b_ih + b_hh
            i = jax.nn.sigmoid(gates[:, :H])
            f = jax.nn.sigmoid(gates[:, H:2 * H])
            g = jnp.tanh(gates[:, 2 * H:3 * H])
            o = jax.nn.sigmoid(gates[:, 3 * H:])
            c = f * c + i * g
            h = o * jnp.tanh(c)
            outs.append(h)
        h_seq = jnp.stack(outs, axis=1)
    return h_seq[:, -1, :] @ params["fc_w"].T + params["fc_b"]


# TODO(synk): nn.CrossEntropyLoss / torch.optim.Adam are training-only and not
# part of the forward pass; they are not translated.

if __name__ == "__main__":
    key = jax.random.PRNGKey(0)
    pkey, xkey = jax.random.split(key)
    params = init_params(pkey)
    prep = prepare_params(params)
    x = jax.random.normal(xkey, (BATCH, SEQ_LEN, INPUT_SIZE), jnp.float32)

    forward = build_forward(prep, SEQ_LEN, BATCH, INPUT_SIZE)
    logits = forward(x, prep["w_pack"], prep["b_pack"])
    jax.block_until_ready(logits)
    assert logits.shape == (BATCH, NUM_CLASSES)

    ref = rnn_forward_ref(x, params)
    # Tolerance loosened vs. the pure-f32 run because matmul operands are bf16
    # (MXU-native) by design; accumulation and all element-wise math stay f32.
    np.testing.assert_allclose(np.asarray(logits), np.asarray(ref),
                               rtol=2e-2, atol=2e-2)
    print("KERNEL_OK")
</pallas_src>

<mosaic_0001>
module attributes {stable_mosaic.version = 11 : i64} {
  func.func @kernel(%arg0: memref<64x16xbf16, #tpu.memory_space<vmem>>, %arg1: memref<144x128xbf16, #tpu.memory_space<vmem>>, %arg2: memref<3x128xf32, #tpu.memory_space<vmem>>, %arg3: memref<8x128xf32, #tpu.memory_space<vmem>>) attributes {dimension_semantics = [], scalar_prefetch = 0 : i64, scratch_operands = 0 : i64, tpu.core_type = #tpu.core_type<tc>} {
    %c0 = arith.constant 0 : index
    %c0_0 = arith.constant 0 : index
    %0 = vector.load %arg1[%c0, %c0_0] : memref<144x128xbf16, #tpu.memory_space<vmem>>, vector<16x128xbf16>
    %c16 = arith.constant 16 : index
    %c0_1 = arith.constant 0 : index
    %1 = vector.load %arg1[%c16, %c0_1] : memref<144x128xbf16, #tpu.memory_space<vmem>>, vector<32x128xbf16>
    %c0_2 = arith.constant 0 : index
    %c0_3 = arith.constant 0 : index
    %2 = vector.load %arg2[%c0_2, %c0_3] : memref<3x128xf32, #tpu.memory_space<vmem>>, vector<1x128xf32>
    %c48 = arith.constant 48 : index
    %c0_4 = arith.constant 0 : index
    %3 = vector.load %arg1[%c48, %c0_4] : memref<144x128xbf16, #tpu.memory_space<vmem>>, vector<32x128xbf16>
    %c80 = arith.constant 80 : index
    %c0_5 = arith.constant 0 : index
    %4 = vector.load %arg1[%c80, %c0_5] : memref<144x128xbf16, #tpu.memory_space<vmem>>, vector<32x128xbf16>
    %c1 = arith.constant 1 : index
    %c0_6 = arith.constant 0 : index
    %5 = vector.load %arg2[%c1, %c0_6] : memref<3x128xf32, #tpu.memory_space<vmem>>, vector<1x128xf32>
    %c112 = arith.constant 112 : index
    %c0_7 = arith.constant 0 : index
    %6 = vector.load %arg1[%c112, %c0_7] : memref<144x128xbf16, #tpu.memory_space<vmem>>, vector<32x128xbf16>
    %c2 = arith.constant 2 : index
    %c0_8 = arith.constant 0 : index
    %7 = vector.load %arg2[%c2, %c0_8] : memref<3x128xf32, #tpu.memory_space<vmem>>, vector<1x128xf32>
    %c0_9 = arith.constant 0 : index
    %c0_10 = arith.constant 0 : index
    %8 = vector.load %arg0[%c0_9, %c0_10] : memref<64x16xbf16, #tpu.memory_space<vmem>>, vector<64x16xbf16>
    %cst = arith.constant dense<0.000000e+00> : vector<64x128xf32>
    %9 = tpu.matmul %8, %0, %cst {dimension_numbers = #tpu.dot_dimension_numbers<[1], [0], [0], [1], [0, 0, 1, 1], [], []>} : vector<64x16xbf16>, vector<16x128xbf16>, vector<64x128xf32> -> vector<64x128xf32>
    %10 = vector.broadcast %2 : vector<1x128xf32> to vector<64x128xf32>
    %11 = arith.addf %9, %10 : vector<64x128xf32>
    %cst_11 = arith.constant 0.000000e+00 : bf16
    %12 = vector.broadcast %cst_11 : bf16 to vector<8x32xbf16>
    %cst_12 = arith.constant 0.000000e+00 : bf16
    %13 = vector.broadcast %cst_12 : bf16 to vector<8x32xbf16>
    %cst_13 = arith.constant 0.000000e+00 : f32
    %14 = vector.broadcast %cst_13 : f32 to vector<8x32xf32>
    %cst_14 = arith.constant 0.000000e+00 : f32
    %15 = vector.broadcast %cst_14 : f32 to vector<8x32xf32>
    %16 = vector.extract_strided_slice %11 {offsets = [0, 0], sizes = [8, 128], strides = [1, 1]} : vector<64x128xf32> to vector<8x128xf32>
    %cst_15 = arith.constant dense<0.000000e+00> : vector<8x128xf32>
    %17 = tpu.matmul %12, %1, %cst_15 {dimension_numbers = #tpu.dot_dimension_numbers<[1], [0], [0], [1], [0, 0, 1, 1], [], []>} : vector<8x32xbf16>, vector<32x128xbf16>, vector<8x128xf32> -> vector<8x128xf32>
    %18 = arith.addf %16, %17 : vector<8x128xf32>
    %19 = arith.negf %18 : vector<8x128xf32>
    %20 = math.exp %19 : vector<8x128xf32>
    %cst_16 = arith.constant 1.000000e+00 : f32
    %21 = vector.broadcast %cst_16 : f32 to vector<8x128xf32>
    %22 = arith.addf %21, %20 : vector<8x128xf32>
    %23 = arith.divf %21, %22 : vector<8x128xf32>
    %24 = math.tanh %18 : vector<8x128xf32>
    %25 = vector.extract_strided_slice %23 {offsets = [0, 0], sizes = [8, 32], strides = [1, 1]} : vector<8x128xf32> to vector<8x32xf32>
    %26 = vector.extract_strided_slice %23 {offsets = [0, 32], sizes = [8, 32], strides = [1, 1]} : vector<8x128xf32> to vector<8x32xf32>
    %27 = vector.extract_strided_slice %23 {offsets = [0, 96], sizes = [8, 32], strides = [1, 1]} : vector<8x128xf32> to vector<8x32xf32>
    %28 = vector.extract_strided_slice %24 {offsets = [0, 64], sizes = [8, 32], strides = [1, 1]} : vector<8x128xf32> to vector<8x32xf32>
    %29 = arith.mulf %26, %14 : vector<8x32xf32>
    %30 = arith.mulf %25, %28 : vector<8x32xf32>
    %31 = arith.addf %29, %30 : vector<8x32xf32>
    %32 = math.tanh %31 : vector<8x32xf32>
    %33 = arith.mulf %27, %32 : vector<8x32xf32>
    %34 = arith.truncf %33 : vector<8x32xf32> to vector<8x32xbf16>
    %cst_17 = arith.constant dense<0.000000e+00> : vector<8x128xf32>
    %35 = tpu.matmul %34, %3, %cst_17 {dimension_numbers = #tpu.dot_dimension_numbers<[1], [0], [0], [1], [0, 0, 1, 1], [], []>} : vector<8x32xbf16>, vector<32x128xbf16>, vector<8x128xf32> -> vector<8x128xf32>
    %36 = vector.broadcast %5 : vector<1x128xf32> to vector<8x128xf32>
    %37 = arith.addf %35, %36 : vector<8x128xf32>
    %cst_18 = arith.constant dense<0.000000e+00> : vector<8x128xf32>
    %38 = tpu.matmul %13, %4, %cst_18 {dimension_numbers = #tpu.dot_dimension_numbers<[1], [0], [0], [1], [0, 0, 1, 1], [], []>} : vector<8x32xbf16>, vector<32x128xbf16>, vector<8x128xf32> -> vector<8x128xf32>
    %39 = arith.addf %37, %38 : vector<8x128xf32>
    %40 = arith.negf %39 : vector<8x128xf32>
    %41 = math.exp %40 : vector<8x128xf32>
    %cst_19 = arith.constant 1.000000e+00 : f32
    %42 = vector.broadcast %cst_19 : f32 to vector<8x128xf32>
    %43 = arith.addf %42, %41 : vector<8x128xf32>
    %44 = arith.divf %42, %43 : vector<8x128xf32>
    %45 = math.tanh %39 : vector<8x128xf32>
    %46 = vector.extract_strided_slice %44 {offsets = [0, 0], sizes = [8, 32], strides = [1, 1]} : vector<8x128xf32> to vector<8x32xf32>
    %47 = vector.extract_strided_slice %44 {offsets = [0, 32], sizes = [8, 32], strides = [1, 1]} : vector<8x128xf32> to vector<8x32xf32>
    %48 = vector.extract_strided_slice %44 {offsets = [0, 96], sizes = [8, 32], strides = [1, 1]} : vector<8x128xf32> to vector<8x32xf32>
    %49 = vector.extract_strided_slice %45 {offsets = [0, 64], sizes = [8, 32], strides = [1, 1]} : vector<8x128xf32> to vector<8x32xf32>
    %50 = arith.mulf %47, %15 : vector<8x32xf32>
    %51 = arith.mulf %46, %49 : vector<8x32xf32>
    %52 = arith.addf %50, %51 : vector<8x32xf32>
    %53 = math.tanh %52 : vector<8x32xf32>
    %54 = arith.mulf %48, %53 : vector<8x32xf32>
    %55 = arith.truncf %54 : vector<8x32xf32> to vector<8x32xbf16>
    %56 = vector.extract_strided_slice %11 {offsets = [8, 0], sizes = [8, 128], strides = [1, 1]} : vector<64x128xf32> to vector<8x128xf32>
    %cst_20 = arith.constant dense<0.000000e+00> : vector<8x128xf32>
    %57 = tpu.matmul %34, %1, %cst_20 {dimension_numbers = #tpu.dot_dimension_numbers<[1], [0], [0], [1], [0, 0, 1, 1], [], []>} : vector<8x32xbf16>, vector<32x128xbf16>, vector<8x128xf32> -> vector<8x128xf32>
    %58 = arith.addf %56, %57 : vector<8x128xf32>
    %59 = arith.negf %58 : vector<8x128xf32>
    %60 = math.exp %59 : vector<8x128xf32>
    %cst_21 = arith.constant 1.000000e+00 : f32
    %61 = vector.broadcast %cst_21 : f32 to vector<8x128xf32>
    %62 = arith.addf %61, %60 : vector<8x128xf32>
    %63 = arith.divf %61, %62 : vector<8x128xf32>
    %64 = math.tanh %58 : vector<8x128xf32>
    %65 = vector.extract_strided_slice %63 {offsets = [0, 0], sizes = [8, 32], strides = [1, 1]} : vector<8x128xf32> to vector<8x32xf32>
    %66 = vector.extract_strided_slice %63 {offsets = [0, 32], sizes = [8, 32], strides = [1, 1]} : vector<8x128xf32> to vector<8x32xf32>
    %67 = vector.extract_strided_slice %63 {offsets = [0, 96], sizes = [8, 32], strides = [1, 1]} : vector<8x128xf32> to vector<8x32xf32>
    %68 = vector.extract_strided_slice %64 {offsets = [0, 64], sizes = [8, 32], strides = [1, 1]} : vector<8x128xf32> to vector<8x32xf32>
    %69 = arith.mulf %66, %31 : vector<8x32xf32>
    %70 = arith.mulf %65, %68 : vector<8x32xf32>
    %71 = arith.addf %69, %70 : vector<8x32xf32>
    %72 = math.tanh %71 : vector<8x32xf32>
    %73 = arith.mulf %67, %72 : vector<8x32xf32>
    %74 = arith.truncf %73 : vector<8x32xf32> to vector<8x32xbf16>
    %cst_22 = arith.constant dense<0.000000e+00> : vector<8x128xf32>
    %75 = tpu.matmul %74, %3, %cst_22 {dimension_numbers = #tpu.dot_dimension_numbers<[1], [0], [0], [1], [0, 0, 1, 1], [], []>} : vector<8x32xbf16>, vector<32x128xbf16>, vector<8x128xf32> -> vector<8x128xf32>
    %76 = vector.broadcast %5 : vector<1x128xf32> to vector<8x128xf32>
    %77 = arith.addf %75, %76 : vector<8x128xf32>
    %cst_23 = arith.constant dense<0.000000e+00> : vector<8x128xf32>
    %78 = tpu.matmul %55, %4, %cst_23 {dimension_numbers = #tpu.dot_dimension_numbers<[1], [0], [0], [1], [0, 0, 1, 1], [], []>} : vector<8x32xbf16>, vector<32x128xbf16>, vector<8x128xf32> -> vector<8x128xf32>
    %79 = arith.addf %77, %78 : vector<8x128xf32>
    %80 = arith.negf %79 : vector<8x128xf32>
    %81 = math.exp %80 : vector<8x128xf32>
    %cst_24 = arith.constant 1.000000e+00 : f32
    %82 = vector.broadcast %cst_24 : f32 to vector<8x128xf32>
    %83 = arith.addf %82, %81 : vector<8x128xf32>
    %84 = arith.divf %82, %83 : vector<8x128xf32>
    %85 = math.tanh %79 : vector<8x128xf32>
    %86 = vector.extract_strided_slice %84 {offsets = [0, 0], sizes = [8, 32], strides = [1, 1]} : vector<8x128xf32> to vector<8x32xf32>
    %87 = vector.extract_strided_slice %84 {offsets = [0, 32], sizes = [8, 32], strides = [1, 1]} : vector<8x128xf32> to vector<8x32xf32>
    %88 = vector.extract_strided_slice %84 {offsets = [0, 96], sizes = [8, 32], strides = [1, 1]} : vector<8x128xf32> to vector<8x32xf32>
    %89 = vector.extract_strided_slice %85 {offsets = [0, 64], sizes = [8, 32], strides = [1, 1]} : vector<8x128xf32> to vector<8x32xf32>
    %90 = arith.mulf %87, %52 : vector<8x32xf32>
    %91 = arith.mulf %86, %89 : vector<8x32xf32>
    %92 = arith.addf %90, %91 : vector<8x32xf32>
    %93 = math.tanh %92 : vector<8x32xf32>
    %94 = arith.mulf %88, %93 : vector<8x32xf32>
    %95 = arith.truncf %94 : vector<8x32xf32> to vector<8x32xbf16>
    %96 = vector.extract_strided_slice %11 {offsets = [16, 0], sizes = [8, 128], strides = [1, 1]} : vector<64x128xf32> to vector<8x128xf32>
    %cst_25 = arith.constant dense<0.000000e+00> : vector<8x128xf32>
    %97 = tpu.matmul %74, %1, %cst_25 {dimension_numbers = #tpu.dot_dimension_numbers<[1], [0], [0], [1], [0, 0, 1, 1], [], []>} : vector<8x32xbf16>, vector<32x128xbf16>, vector<8x128xf32> -> vector<8x128xf32>
    %98 = arith.addf %96, %97 : vector<8x128xf32>
    %99 = arith.negf %98 : vector<8x128xf32>
    %100 = math.exp %99 : vector<8x128xf32>
    %cst_26 = arith.constant 1.000000e+00 : f32
    %101 = vector.broadcast %cst_26 : f32 to vector<8x128xf32>
    %102 = arith.addf %101, %100 : vector<8x128xf32>
    %103 = arith.divf %101, %102 : vector<8x128xf32>
    %104 = math.tanh %98 : vector<8x128xf32>
    %105 = vector.extract_strided_slice %103 {offsets = [0, 0], sizes = [8, 32], strides = [1, 1]} : vector<8x128xf32> to vector<8x32xf32>
    %106 = vector.extract_strided_slice %103 {offsets = [0, 32], sizes = [8, 32], strides = [1, 1]} : vector<8x128xf32> to vector<8x32xf32>
    %107 = vector.extract_strided_slice %103 {offsets = [0, 96], sizes = [8, 32], strides = [1, 1]} : vector<8x128xf32> to vector<8x32xf32>
    %108 = vector.extract_strided_slice %104 {offsets = [0, 64], sizes = [8, 32], strides = [1, 1]} : vector<8x128xf32> to vector<8x32xf32>
    %109 = arith.mulf %106, %71 : vector<8x32xf32>
    %110 = arith.mulf %105, %108 : vector<8x32xf32>
    %111 = arith.addf %109, %110 : vector<8x32xf32>
    %112 = math.tanh %111 : vector<8x32xf32>
    %113 = arith.mulf %107, %112 : vector<8x32xf32>
    %114 = arith.truncf %113 : vector<8x32xf32> to vector<8x32xbf16>
    %cst_27 = arith.constant dense<0.000000e+00> : vector<8x128xf32>
    %115 = tpu.matmul %114, %3, %cst_27 {dimension_numbers = #tpu.dot_dimension_numbers<[1], [0], [0], [1], [0, 0, 1, 1], [], []>} : vector<8x32xbf16>, vector<32x128xbf16>, vector<8x128xf32> -> vector<8x128xf32>
    %116 = vector.broadcast %5 : vector<1x128xf32> to vector<8x128xf32>
    %117 = arith.addf %115, %116 : vector<8x128xf32>
    %cst_28 = arith.constant dense<0.000000e+00> : vector<8x128xf32>
    %118 = tpu.matmul %95, %4, %cst_28 {dimension_numbers = #tpu.dot_dimension_numbers<[1], [0], [0], [1], [0, 0, 1, 1], [], []>} : vector<8x32xbf16>, vector<32x128xbf16>, vector<8x128xf32> -> vector<8x128xf32>
    %119 = arith.addf %117, %118 : vector<8x128xf32>
    %120 = arith.negf %119 : vector<8x128xf32>
    %121 = math.exp %120 : vector<8x128xf32>
    %cst_29 = arith.constant 1.000000e+00 : f32
    %122 = vector.broadcast %cst_29 : f32 to vector<8x128xf32>
    %123 = arith.addf %122, %121 : vector<8x128xf32>
    %124 = arith.divf %122, %123 : vector<8x128xf32>
    %125 = math.tanh %119 : vector<8x128xf32>
    %126 = vector.extract_strided_slice %124 {offsets = [0, 0], sizes = [8, 32], strides = [1, 1]} : vector<8x128xf32> to vector<8x32xf32>
    %127 = vector.extract_strided_slice %124 {offsets = [0, 32], sizes = [8, 32], strides = [1, 1]} : vector<8x128xf32> to vector<8x32xf32>
    %128 = vector.extract_strided_slice %124 {offsets = [0, 96], sizes = [8, 32], strides = [1, 1]} : vector<8x128xf32> to vector<8x32xf32>
    %129 = vector.extract_strided_slice %125 {offsets = [0, 64], sizes = [8, 32], strides = [1, 1]} : vector<8x128xf32> to vector<8x32xf32>
    %130 = arith.mulf %127, %92 : vector<8x32xf32>
    %131 = arith.mulf %126, %129 : vector<8x32xf32>
    %132 = arith.addf %130, %131 : vector<8x32xf32>
    %133 = math.tanh %132 : vector<8x32xf32>
    %134 = arith.mulf %128, %133 : vector<8x32xf32>
    %135 = arith.truncf %134 : vector<8x32xf32> to vector<8x32xbf16>
    %136 = vector.extract_strided_slice %11 {offsets = [24, 0], sizes = [8, 128], strides = [1, 1]} : vector<64x128xf32> to vector<8x128xf32>
    %cst_30 = arith.constant dense<0.000000e+00> : vector<8x128xf32>
    %137 = tpu.matmul %114, %1, %cst_30 {dimension_numbers = #tpu.dot_dimension_numbers<[1], [0], [0], [1], [0, 0, 1, 1], [], []>} : vector<8x32xbf16>, vector<32x128xbf16>, vector<8x128xf32> -> vector<8x128xf32>
    %138 = arith.addf %136, %137 : vector<8x128xf32>
    %139 = arith.negf %138 : vector<8x128xf32>
    %140 = math.exp %139 : vector<8x128xf32>
    %cst_31 = arith.constant 1.000000e+00 : f32
    %141 = vector.broadcast %cst_31 : f32 to vector<8x128xf32>
    %142 = arith.addf %141, %140 : vector<8x128xf32>
    %143 = arith.divf %141, %142 : vector<8x128xf32>
    %144 = math.tanh %138 : vector<8x128xf32>
    %145 = vector.extract_strided_slice %143 {offsets = [0, 0], sizes = [8, 32], strides = [1, 1]} : vector<8x128xf32> to vector<8x32xf32>
    %146 = vector.extract_strided_slice %143 {offsets = [0, 32], sizes = [8, 32], strides = [1, 1]} : vector<8x128xf32> to vector<8x32xf32>
    %147 = vector.extract_strided_slice %143 {offsets = [0, 96], sizes = [8, 32], strides = [1, 1]} : vector<8x128xf32> to vector<8x32xf32>
    %148 = vector.extract_strided_slice %144 {offsets = [0, 64], sizes = [8, 32], strides = [1, 1]} : vector<8x128xf32> to vector<8x32xf32>
    %149 = arith.mulf %146, %111 : vector<8x32xf32>
    %150 = arith.mulf %145, %148 : vector<8x32xf32>
    %151 = arith.addf %149, %150 : vector<8x32xf32>
    %152 = math.tanh %151 : vector<8x32xf32>
    %153 = arith.mulf %147, %152 : vector<8x32xf32>
    %154 = arith.truncf %153 : vector<8x32xf32> to vector<8x32xbf16>
    %cst_32 = arith.constant dense<0.000000e+00> : vector<8x128xf32>
    %155 = tpu.matmul %154, %3, %cst_32 {dimension_numbers = #tpu.dot_dimension_numbers<[1], [0], [0], [1], [0, 0, 1, 1], [], []>} : vector<8x32xbf16>, vector<32x128xbf16>, vector<8x128xf32> -> vector<8x128xf32>
    %156 = vector.broadcast %5 : vector<1x128xf32> to vector<8x128xf32>
    %157 = arith.addf %155, %156 : vector<8x128xf32>
    %cst_33 = arith.constant dense<0.000000e+00> : vector<8x128xf32>
    %158 = tpu.matmul %135, %4, %cst_33 {dimension_numbers = #tpu.dot_dimension_numbers<[1], [0], [0], [1], [0, 0, 1, 1], [], []>} : vector<8x32xbf16>, vector<32x128xbf16>, vector<8x128xf32> -> vector<8x128xf32>
    %159 = arith.addf %157, %158 : vector<8x128xf32>
    %160 = arith.negf %159 : vector<8x128xf32>
    %161 = math.exp %160 : vector<8x128xf32>
    %cst_34 = arith.constant 1.000000e+00 : f32
    %162 = vector.broadcast %cst_34 : f32 to vector<8x128xf32>
    %163 = arith.addf %162, %161 : vector<8x128xf32>
    %164 = arith.divf %162, %163 : vector<8x128xf32>
    %165 = math.tanh %159 : vector<8x128xf32>
    %166 = vector.extract_strided_slice %164 {offsets = [0, 0], sizes = [8, 32], strides = [1, 1]} : vector<8x128xf32> to vector<8x32xf32>
    %167 = vector.extract_strided_slice %164 {offsets = [0, 32], sizes = [8, 32], strides = [1, 1]} : vector<8x128xf32> to vector<8x32xf32>
    %168 = vector.extract_strided_slice %164 {offsets = [0, 96], sizes = [8, 32], strides = [1, 1]} : vector<8x128xf32> to vector<8x32xf32>
    %169 = vector.extract_strided_slice %165 {offsets = [0, 64], sizes = [8, 32], strides = [1, 1]} : vector<8x128xf32> to vector<8x32xf32>
    %170 = arith.mulf %167, %132 : vector<8x32xf32>
    %171 = arith.mulf %166, %169 : vector<8x32xf32>
    %172 = arith.addf %170, %171 : vector<8x32xf32>
    %173 = math.tanh %172 : vector<8x32xf32>
    %174 = arith.mulf %168, %173 : vector<8x32xf32>
    %175 = arith.truncf %174 : vector<8x32xf32> to vector<8x32xbf16>
    %176 = vector.extract_strided_slice %11 {offsets = [32, 0], sizes = [8, 128], strides = [1, 1]} : vector<64x128xf32> to vector<8x128xf32>
    %cst_35 = arith.constant dense<0.000000e+00> : vector<8x128xf32>
    %177 = tpu.matmul %154, %1, %cst_35 {dimension_numbers = #tpu.dot_dimension_numbers<[1], [0], [0], [1], [0, 0, 1, 1], [], []>} : vector<8x32xbf16>, vector<32x128xbf16>, vector<8x128xf32> -> vector<8x128xf32>
    %178 = arith.addf %176, %177 : vector<8x128xf32>
    %179 = arith.negf %178 : vector<8x128xf32>
    %180 = math.exp %179 : vector<8x128xf32>
    %cst_36 = arith.constant 1.000000e+00 : f32
    %181 = vector.broadcast %cst_36 : f32 to vector<8x128xf32>
    %182 = arith.addf %181, %180 : vector<8x128xf32>
    %183 = arith.divf %181, %182 : vector<8x128xf32>
    %184 = math.tanh %178 : vector<8x128xf32>
    %185 = vector.extract_strided_slice %183 {offsets = [0, 0], sizes = [8, 32], strides = [1, 1]} : vector<8x128xf32> to vector<8x32xf32>
    %186 = vector.extract_strided_slice %183 {offsets = [0, 32], sizes = [8, 32], strides = [1, 1]} : vector<8x128xf32> to vector<8x32xf32>
    %187 = vector.extract_strided_slice %183 {offsets = [0, 96], sizes = [8, 32], strides = [1, 1]} : vector<8x128xf32> to vector<8x32xf32>
    %188 = vector.extract_strided_slice %184 {offsets = [0, 64], sizes = [8, 32], strides = [1, 1]} : vector<8x128xf32> to vector<8x32xf32>
    %189 = arith.mulf %186, %151 : vector<8x32xf32>
    %190 = arith.mulf %185, %188 : vector<8x32xf32>
    %191 = arith.addf %189, %190 : vector<8x32xf32>
    %192 = math.tanh %191 : vector<8x32xf32>
    %193 = arith.mulf %187, %192 : vector<8x32xf32>
    %194 = arith.truncf %193 : vector<8x32xf32> to vector<8x32xbf16>
    %cst_37 = arith.constant dense<0.000000e+00> : vector<8x128xf32>
    %195 = tpu.matmul %194, %3, %cst_37 {dimension_numbers = #tpu.dot_dimension_numbers<[1], [0], [0], [1], [0, 0, 1, 1], [], []>} : vector<8x32xbf16>, vector<32x128xbf16>, vector<8x128xf32> -> vector<8x128xf32>
    %196 = vector.broadcast %5 : vector<1x128xf32> to vector<8x128xf32>
    %197 = arith.addf %195, %196 : vector<8x128xf32>
    %cst_38 = arith.constant dense<0.000000e+00> : vector<8x128xf32>
    %198 = tpu.matmul %175, %4, %cst_38 {dimension_numbers = #tpu.dot_dimension_numbers<[1], [0], [0], [1], [0, 0, 1, 1], [], []>} : vector<8x32xbf16>, vector<32x128xbf16>, vector<8x128xf32> -> vector<8x128xf32>
    %199 = arith.addf %197, %198 : vector<8x128xf32>
    %200 = arith.negf %199 : vector<8x128xf32>
    %201 = math.exp %200 : vector<8x128xf32>
    %cst_39 = arith.constant 1.000000e+00 : f32
    %202 = vector.broadcast %cst_39 : f32 to vector<8x128xf32>
    %203 = arith.addf %202, %201 : vector<8x128xf32>
    %204 = arith.divf %202, %203 : vector<8x128xf32>
    %205 = math.tanh %199 : vector<8x128xf32>
    %206 = vector.extract_strided_slice %204 {offsets = [0, 0], sizes = [8, 32], strides = [1, 1]} : vector<8x128xf32> to vector<8x32xf32>
    %207 = vector.extract_strided_slice %204 {offsets = [0, 32], sizes = [8, 32], strides = [1, 1]} : vector<8x128xf32> to vector<8x32xf32>
    %208 = vector.extract_strided_slice %204 {offsets = [0, 96], sizes = [8, 32], strides = [1, 1]} : vector<8x128xf32> to vector<8x32xf32>
    %209 = vector.extract_strided_slice %205 {offsets = [0, 64], sizes = [8, 32], strides = [1, 1]} : vector<8x128xf32> to vector<8x32xf32>
    %210 = arith.mulf %207, %172 : vector<8x32xf32>
    %211 = arith.mulf %206, %209 : vector<8x32xf32>
    %212 = arith.addf %210, %211 : vector<8x32xf32>
    %213 = math.tanh %212 : vector<8x32xf32>
    %214 = arith.mulf %208, %213 : vector<8x32xf32>
    %215 = arith.truncf %214 : vector<8x32xf32> to vector<8x32xbf16>
    %216 = vector.extract_strided_slice %11 {offsets = [40, 0], sizes = [8, 128], strides = [1, 1]} : vector<64x128xf32> to vector<8x128xf32>
    %cst_40 = arith.constant dense<0.000000e+00> : vector<8x128xf32>
    %217 = tpu.matmul %194, %1, %cst_40 {dimension_numbers = #tpu.dot_dimension_numbers<[1], [0], [0], [1], [0, 0, 1, 1], [], []>} : vector<8x32xbf16>, vector<32x128xbf16>, vector<8x128xf32> -> vector<8x128xf32>
    %218 = arith.addf %216, %217 : vector<8x128xf32>
    %219 = arith.negf %218 : vector<8x128xf32>
    %220 = math.exp %219 : vector<8x128xf32>
    %cst_41 = arith.constant 1.000000e+00 : f32
    %221 = vector.broadcast %cst_41 : f32 to vector<8x128xf32>
    %222 = arith.addf %221, %220 : vector<8x128xf32>
    %223 = arith.divf %221, %222 : vector<8x128xf32>
    %224 = math.tanh %218 : vector<8x128xf32>
    %225 = vector.extract_strided_slice %223 {offsets = [0, 0], sizes = [8, 32], strides = [1, 1]} : vector<8x128xf32> to vector<8x32xf32>
    %226 = vector.extract_strided_slice %223 {offsets = [0, 32], sizes = [8, 32], strides = [1, 1]} : vector<8x128xf32> to vector<8x32xf32>
    %227 = vector.extract_strided_slice %223 {offsets = [0, 96], sizes = [8, 32], strides = [1, 1]} : vector<8x128xf32> to vector<8x32xf32>
    %228 = vector.extract_strided_slice %224 {offsets = [0, 64], sizes = [8, 32], strides = [1, 1]} : vector<8x128xf32> to vector<8x32xf32>
    %229 = arith.mulf %226, %191 : vector<8x32xf32>
    %230 = arith.mulf %225, %228 : vector<8x32xf32>
    %231 = arith.addf %229, %230 : vector<8x32xf32>
    %232 = math.tanh %231 : vector<8x32xf32>
    %233 = arith.mulf %227, %232 : vector<8x32xf32>
    %234 = arith.truncf %233 : vector<8x32xf32> to vector<8x32xbf16>
    %cst_42 = arith.constant dense<0.000000e+00> : vector<8x128xf32>
    %235 = tpu.matmul %234, %3, %cst_42 {dimension_numbers = #tpu.dot_dimension_numbers<[1], [0], [0], [1], [0, 0, 1, 1], [], []>} : vector<8x32xbf16>, vector<32x128xbf16>, vector<8x128xf32> -> vector<8x128xf32>
    %236 = vector.broadcast %5 : vector<1x128xf32> to vector<8x128xf32>
    %237 = arith.addf %235, %236 : vector<8x128xf32>
    %cst_43 = arith.constant dense<0.000000e+00> : vector<8x128xf32>
    %238 = tpu.matmul %215, %4, %cst_43 {dimension_numbers = #tpu.dot_dimension_numbers<[1], [0], [0], [1], [0, 0, 1, 1], [], []>} : vector<8x32xbf16>, vector<32x128xbf16>, vector<8x128xf32> -> vector<8x128xf32>
    %239 = arith.addf %237, %238 : vector<8x128xf32>
    %240 = arith.negf %239 : vector<8x128xf32>
    %241 = math.exp %240 : vector<8x128xf32>
    %cst_44 = arith.constant 1.000000e+00 : f32
    %242 = vector.broadcast %cst_44 : f32 to vector<8x128xf32>
    %243 = arith.addf %242, %241 : vector<8x128xf32>
    %244 = arith.divf %242, %243 : vector<8x128xf32>
    %245 = math.tanh %239 : vector<8x128xf32>
    %246 = vector.extract_strided_slice %244 {offsets = [0, 0], sizes = [8, 32], strides = [1, 1]} : vector<8x128xf32> to vector<8x32xf32>
    %247 = vector.extract_strided_slice %244 {offsets = [0, 32], sizes = [8, 32], strides = [1, 1]} : vector<8x128xf32> to vector<8x32xf32>
    %248 = vector.extract_strided_slice %244 {offsets = [0, 96], sizes = [8, 32], strides = [1, 1]} : vector<8x128xf32> to vector<8x32xf32>
    %249 = vector.extract_strided_slice %245 {offsets = [0, 64], sizes = [8, 32], strides = [1, 1]} : vector<8x128xf32> to vector<8x32xf32>
    %250 = arith.mulf %247, %212 : vector<8x32xf32>
    %251 = arith.mulf %246, %249 : vector<8x32xf32>
    %252 = arith.addf %250, %251 : vector<8x32xf32>
    %253 = math.tanh %252 : vector<8x32xf32>
    %254 = arith.mulf %248, %253 : vector<8x32xf32>
    %255 = arith.truncf %254 : vector<8x32xf32> to vector<8x32xbf16>
    %256 = vector.extract_strided_slice %11 {offsets = [48, 0], sizes = [8, 128], strides = [1, 1]} : vector<64x128xf32> to vector<8x128xf32>
    %cst_45 = arith.constant dense<0.000000e+00> : vector<8x128xf32>
    %257 = tpu.matmul %234, %1, %cst_45 {dimension_numbers = #tpu.dot_dimension_numbers<[1], [0], [0], [1], [0, 0, 1, 1], [], []>} : vector<8x32xbf16>, vector<32x128xbf16>, vector<8x128xf32> -> vector<8x128xf32>
    %258 = arith.addf %256, %257 : vector<8x128xf32>
    %259 = arith.negf %258 : vector<8x128xf32>
    %260 = math.exp %259 : vector<8x128xf32>
    %cst_46 = arith.constant 1.000000e+00 : f32
    %261 = vector.broadcast %cst_46 : f32 to vector<8x128xf32>
    %262 = arith.addf %261, %260 : vector<8x128xf32>
    %263 = arith.divf %261, %262 : vector<8x128xf32>
    %264 = math.tanh %258 : vector<8x128xf32>
    %265 = vector.extract_strided_slice %263 {offsets = [0, 0], sizes = [8, 32], strides = [1, 1]} : vector<8x128xf32> to vector<8x32xf32>
    %266 = vector.extract_strided_slice %263 {offsets = [0, 32], sizes = [8, 32], strides = [1, 1]} : vector<8x128xf32> to vector<8x32xf32>
    %267 = vector.extract_strided_slice %263 {offsets = [0, 96], sizes = [8, 32], strides = [1, 1]} : vector<8x128xf32> to vector<8x32xf32>
    %268 = vector.extract_strided_slice %264 {offsets = [0, 64], sizes = [8, 32], strides = [1, 1]} : vector<8x128xf32> to vector<8x32xf32>
    %269 = arith.mulf %266, %231 : vector<8x32xf32>
    %270 = arith.mulf %265, %268 : vector<8x32xf32>
    %271 = arith.addf %269, %270 : vector<8x32xf32>
    %272 = math.tanh %271 : vector<8x32xf32>
    %273 = arith.mulf %267, %272 : vector<8x32xf32>
    %274 = arith.truncf %273 : vector<8x32xf32> to vector<8x32xbf16>
    %cst_47 = arith.constant dense<0.000000e+00> : vector<8x128xf32>
    %275 = tpu.matmul %274, %3, %cst_47 {dimension_numbers = #tpu.dot_dimension_numbers<[1], [0], [0], [1], [0, 0, 1, 1], [], []>} : vector<8x32xbf16>, vector<32x128xbf16>, vector<8x128xf32> -> vector<8x128xf32>
    %276 = vector.broadcast %5 : vector<1x128xf32> to vector<8x128xf32>
    %277 = arith.addf %275, %276 : vector<8x128xf32>
    %cst_48 = arith.constant dense<0.000000e+00> : vector<8x128xf32>
    %278 = tpu.matmul %255, %4, %cst_48 {dimension_numbers = #tpu.dot_dimension_numbers<[1], [0], [0], [1], [0, 0, 1, 1], [], []>} : vector<8x32xbf16>, vector<32x128xbf16>, vector<8x128xf32> -> vector<8x128xf32>
    %279 = arith.addf %277, %278 : vector<8x128xf32>
    %280 = arith.negf %279 : vector<8x128xf32>
    %281 = math.exp %280 : vector<8x128xf32>
    %cst_49 = arith.constant 1.000000e+00 : f32
    %282 = vector.broadcast %cst_49 : f32 to vector<8x128xf32>
    %283 = arith.addf %282, %281 : vector<8x128xf32>
    %284 = arith.divf %282, %283 : vector<8x128xf32>
    %285 = math.tanh %279 : vector<8x128xf32>
    %286 = vector.extract_strided_slice %284 {offsets = [0, 0], sizes = [8, 32], strides = [1, 1]} : vector<8x128xf32> to vector<8x32xf32>
    %287 = vector.extract_strided_slice %284 {offsets = [0, 32], sizes = [8, 32], strides = [1, 1]} : vector<8x128xf32> to vector<8x32xf32>
    %288 = vector.extract_strided_slice %284 {offsets = [0, 96], sizes = [8, 32], strides = [1, 1]} : vector<8x128xf32> to vector<8x32xf32>
    %289 = vector.extract_strided_slice %285 {offsets = [0, 64], sizes = [8, 32], strides = [1, 1]} : vector<8x128xf32> to vector<8x32xf32>
    %290 = arith.mulf %287, %252 : vector<8x32xf32>
    %291 = arith.mulf %286, %289 : vector<8x32xf32>
    %292 = arith.addf %290, %291 : vector<8x32xf32>
    %293 = math.tanh %292 : vector<8x32xf32>
    %294 = arith.mulf %288, %293 : vector<8x32xf32>
    %295 = arith.truncf %294 : vector<8x32xf32> to vector<8x32xbf16>
    %296 = vector.extract_strided_slice %11 {offsets = [56, 0], sizes = [8, 128], strides = [1, 1]} : vector<64x128xf32> to vector<8x128xf32>
    %cst_50 = arith.constant dense<0.000000e+00> : vector<8x128xf32>
    %297 = tpu.matmul %274, %1, %cst_50 {dimension_numbers = #tpu.dot_dimension_numbers<[1], [0], [0], [1], [0, 0, 1, 1], [], []>} : vector<8x32xbf16>, vector<32x128xbf16>, vector<8x128xf32> -> vector<8x128xf32>
    %298 = arith.addf %296, %297 : vector<8x128xf32>
    %299 = arith.negf %298 : vector<8x128xf32>
    %300 = math.exp %299 : vector<8x128xf32>
    %cst_51 = arith.constant 1.000000e+00 : f32
    %301 = vector.broadcast %cst_51 : f32 to vector<8x128xf32>
    %302 = arith.addf %301, %300 : vector<8x128xf32>
    %303 = arith.divf %301, %302 : vector<8x128xf32>
    %304 = math.tanh %298 : vector<8x128xf32>
    %305 = vector.extract_strided_slice %303 {offsets = [0, 0], sizes = [8, 32], strides = [1, 1]} : vector<8x128xf32> to vector<8x32xf32>
    %306 = vector.extract_strided_slice %303 {offsets = [0, 32], sizes = [8, 32], strides = [1, 1]} : vector<8x128xf32> to vector<8x32xf32>
    %307 = vector.extract_strided_slice %303 {offsets = [0, 96], sizes = [8, 32], strides = [1, 1]} : vector<8x128xf32> to vector<8x32xf32>
    %308 = vector.extract_strided_slice %304 {offsets = [0, 64], sizes = [8, 32], strides = [1, 1]} : vector<8x128xf32> to vector<8x32xf32>
    %309 = arith.mulf %306, %271 : vector<8x32xf32>
    %310 = arith.mulf %305, %308 : vector<8x32xf32>
    %311 = arith.addf %309, %310 : vector<8x32xf32>
    %312 = math.tanh %311 : vector<8x32xf32>
    %313 = arith.mulf %307, %312 : vector<8x32xf32>
    %314 = arith.truncf %313 : vector<8x32xf32> to vector<8x32xbf16>
    %cst_52 = arith.constant dense<0.000000e+00> : vector<8x128xf32>
    %315 = tpu.matmul %314, %3, %cst_52 {dimension_numbers = #tpu.dot_dimension_numbers<[1], [0], [0], [1], [0, 0, 1, 1], [], []>} : vector<8x32xbf16>, vector<32x128xbf16>, vector<8x128xf32> -> vector<8x128xf32>
    %316 = vector.broadcast %5 : vector<1x128xf32> to vector<8x128xf32>
    %317 = arith.addf %315, %316 : vector<8x128xf32>
    %cst_53 = arith.constant dense<0.000000e+00> : vector<8x128xf32>
    %318 = tpu.matmul %295, %4, %cst_53 {dimension_numbers = #tpu.dot_dimension_numbers<[1], [0], [0], [1], [0, 0, 1, 1], [], []>} : vector<8x32xbf16>, vector<32x128xbf16>, vector<8x128xf32> -> vector<8x128xf32>
    %319 = arith.addf %317, %318 : vector<8x128xf32>
    %320 = arith.negf %319 : vector<8x128xf32>
    %321 = math.exp %320 : vector<8x128xf32>
    %cst_54 = arith.constant 1.000000e+00 : f32
    %322 = vector.broadcast %cst_54 : f32 to vector<8x128xf32>
    %323 = arith.addf %322, %321 : vector<8x128xf32>
    %324 = arith.divf %322, %323 : vector<8x128xf32>
    %325 = math.tanh %319 : vector<8x128xf32>
    %326 = vector.extract_strided_slice %324 {offsets = [0, 0], sizes = [8, 32], strides = [1, 1]} : vector<8x128xf32> to vector<8x32xf32>
    %327 = vector.extract_strided_slice %324 {offsets = [0, 32], sizes = [8, 32], strides = [1, 1]} : vector<8x128xf32> to vector<8x32xf32>
    %328 = vector.extract_strided_slice %324 {offsets = [0, 96], sizes = [8, 32], strides = [1, 1]} : vector<8x128xf32> to vector<8x32xf32>
    %329 = vector.extract_strided_slice %325 {offsets = [0, 64], sizes = [8, 32], strides = [1, 1]} : vector<8x128xf32> to vector<8x32xf32>
    %330 = arith.mulf %327, %292 : vector<8x32xf32>
    %331 = arith.mulf %326, %329 : vector<8x32xf32>
    %332 = arith.addf %330, %331 : vector<8x32xf32>
    %333 = math.tanh %332 : vector<8x32xf32>
    %334 = arith.mulf %328, %333 : vector<8x32xf32>
    %335 = arith.truncf %334 : vector<8x32xf32> to vector<8x32xbf16>
    %cst_55 = arith.constant dense<0.000000e+00> : vector<8x128xf32>
    %336 = tpu.matmul %335, %6, %cst_55 {dimension_numbers = #tpu.dot_dimension_numbers<[1], [0], [0], [1], [0, 0, 1, 1], [], []>} : vector<8x32xbf16>, vector<32x128xbf16>, vector<8x128xf32> -> vector<8x128xf32>
    %337 = vector.broadcast %7 : vector<1x128xf32> to vector<8x128xf32>
    %338 = arith.addf %336, %337 : vector<8x128xf32>
    %c0_56 = arith.constant 0 : index
    %c0_57 = arith.constant 0 : index
    %339 = vector.load %arg3[%c0_56, %c0_57] : memref<8x128xf32, #tpu.memory_space<vmem>>, vector<8x128xf32>
    tpu.vector_store %arg3[%c0_56, %c0_57], %338 {strides = array<i32>} : memref<8x128xf32, #tpu.memory_space<vmem>>, vector<8x128xf32>,
    return
  }
}

</mosaic_0001>

<bundles_post_ra>
// kernel: fwd.1
= control target key start
LH: loop header
LB: loop body
LE: loop exit
PB: predicated region body
PF: predicated region fallthrough
CT: control target
= control target key end

     0   :  { %v2267_v0 = vmov 0.0   ;;  %vm2268_vm0 = vmmov 0   ;;  %vm74_vm1 = vcmask 130048   ;;  %v2269_v6 = vmov 0   ;;  %s2270_s24 = smov 64   ;;  %s2271_s25 = smov 32   ;;  %s2695_s1 = inlined_call_operand.vmem [shape: bf16[144,128], index: 1, kind: input, shape index: {}]   ;;  %s2696_s0 = inlined_call_operand.vmem [shape: bf16[64,16], index: 0, kind: input, shape index: {}]   ;;  %s2697_s2 = inlined_call_operand.vmem [shape: f32[3,128], index: 2, kind: input, shape index: {}]   ;;  %s2698_s3 = inlined_call_operand.vmem [shape: f32[8,128], index: 3, kind: output, shape index: {}]  }
   0x1   :  { %1878 = vmatprep.subr.bf16.mxu1 %v2267_v0  ;;  %v2123_v1 = vld [vmem:[%s2695_s1] sm:$0xff]   ;;  %1882 = vmatprep.mubr.msk.bf16.mxu1 %vm2268_vm0, %v2267_v0  ;;  %v2301_v2 = vld [vmem:[%s2695_s1 + $0x8] sm:$0xff]   ;;  %v2315_v5 = vld [vmem:[%s2695_s1 + $0x10] sm:$0xff]   ;;  %vm164_vm2 = vcmask 261120  }
   0x2   :  { %1868 = vmatprep.subr.bf16.mxu0 %v2123_v1  ;;  %v2125_v3 = vld [vmem:[%s2696_s0] sm:$0xff]   ;;  %1879 = vmatpush3.bf16.msra.mxu1 %v2301_v2  ;;  %v2126_v4 = vld [vmem:[%s2696_s0 + $0x8] sm:$0xff]   ;;  %v2128_v28 = vld [vmem:[%s2696_s0 + $0x10] sm:$0xff]  }
   0x3   :  { %1869 = vmatpush3.bf16.msra.mxu0 %v2123_v1  ;;  %1870 = vmatprep.mubr.msk.bf16.mxu0 %vm74_vm1, %v2125_v3  ;;  %v2331_v7 = vld [vmem:[%s2697_s2] ss:$0 sm:$0xff]  ;;  %v2129_v29 = vld [vmem:[%s2696_s0 + $0x18] sm:$0xff]   ;;  %v2382_v40 = vld [vmem:[%s2695_s1 + $0x28] sm:$0xff]  }
   0x4   :  { %1880 = vmatprep.subr.bf16.mxu1 %v2267_v0  ;;  %1902 = vmatprep.subr.bf16.mxu0 %v2267_v0  ;;  %v2354_v30 = vld [vmem:[%s2695_s1 + $0x18] sm:$0xff]   ;;  %v2361_v31 = vld [vmem:[%s2695_s1 + $0x20] sm:$0xff]   ;;  %v2390_v42 = vld [vmem:[%s2695_s1 + $0x30] sm:$0xff]  }
   0x5   :  { %v2415_v49 = vld [vmem:[%s2697_s2 + $0x1] ss:$0 sm:$0xff] }
   0x6   :  { %1871 = vmatmul.mubr.msk.bf16.vlgmr.msra.gmra.mrb[0].mxu0 %vm74_vm1, %v2126_v4  ;;  %1881 = vmatpush3.bf16.msra.mxu1 %v2315_v5 }
   0x7   :  { %1903 = vmatpush3.bf16.msra.mxu0 %v2301_v2  ;;  %1886 = vmatprep.subr.bf16.mxu1 %v2267_v0 }
   0x8   :  { %1904 = vmatprep.subr.bf16.mxu0 %v2267_v0  ;;  %1874 = vmatprep.mubr.msk.bf16.mxu0 %vm74_vm1, %v2128_v28 }
   0x9   :  { %1883 = vmatmul.mubr.bf16.vlgmr.msra.gmra.mrb[0].mxu1 %v2269_v6 }
   0xa   :  { %1890 = vmatprep.mubr.msk.bf16.mxu1 %vm2268_vm0, %v2267_v0  ;;  %1887 = vmatpush3.bf16.msra.mxu1 %v2354_v30 }
   0xb   :  { %1905 = vmatpush3.bf16.msra.mxu0 %v2315_v5  ;;  %1888 = vmatprep.subr.bf16.mxu1 %v2267_v0 }
   0xc   :  { %1910 = vmatprep.subr.bf16.mxu0 %v2267_v0 }
   0xe   :  { %1875 = vmatmul.mubr.msk.bf16.gmra.mrb[4].mxu0 %vm74_vm1, %v2129_v29  ;;  %1889 = vmatpush3.bf16.msra.mxu1 %v2361_v31 }
   0xf   :  { %1906 = vmatprep.mubr.msk.bf16.mxu0 %vm2268_vm0, %v2267_v0  ;;  %1894 = vmatprep.subr.bf16.mxu1 %v2267_v0 }
  0xd9   :  { %v2333_v8 = vpop.f32.mrb[0].mxu0 }
  0xda   :  { %v121_v9 = vpop.f32.mrb[1].mxu0 }
  0xdb   :  { %v122_v10 = vadd.f32 %v2331_v7, %v121_v9  ;;  %v2336_v11 = vpop.f32.mrb[2].mxu0 }
  0xdc   :  { %v2338_v12 = vpop.f32.mrb[3].mxu0  ;;  %v202_v13 = vpop.f32.mrb[0].mxu1 }
  0xdd   :  { %v208_v14 = vadd.f32 %v202_v13, %v122_v10  ;;  %v1884_v15 = vpop.f32.mrb[1].mxu1  ;;  %v125_v43 = vadd.f32 %v2331_v7, %v2338_v12 }
  0xde   :  { %v205_v16 = vpop.f32.mrb[2].mxu1 }
  0xdf   :  { %2136 = vtanh.f32 %v208_v14  ;;  %v1885_v17 = vpop.f32.mrb[3].mxu1  ;;  %v1741_v19 = vmul.f32 -1.442695, %v208_v14 }
  0xe1   :  { %2138 = vpow2.f32 %v1741_v19  ;;  %v2371_v36 = vpop.f32.mrb[4].mxu0 }
  0xe2   :  { %v2373_v37 = vpop.f32.mrb[5].mxu0 }
  0xe3   :  { %v2375_v38 = vpop.f32.mrb[6].mxu0 }
  0xe4   :  { %v2377_v39 = vpop.f32.mrb[7].mxu0 }
  0xe9   :  { %v2137_v18 = vpop.eup %2136 }
  0xea   :  { %218 = vrot.lane.b32.xlu0 %v2137_v18, %s2270_s24 }
  0xeb   :  { %v2139_v20 = vpop.eup %2138 }
  0xec   :  { %v212_v21 = vadd.f32 1.0, %v2139_v20 }
  0xee   :  { %2140 = vrcp.f32 %v212_v21 }
  0xf8   :  { %v2141_v22 = vpop.eup %2140 }
  0xf9   :  { %v216_v25 = vmul.f32 0.0, %v2141_v22 }
 0x15c   :  { %v219_v23 = vpop.permute.xlu0 %218 }
 0x15d   :  { %v221_v24 = vmul.f32 %v2141_v22, %v219_v23 }
 0x15f   :  { %223 = vrot.lane.b32.xlu0 %v221_v24, %s2271_s25 }
 0x1d1   :  { %v224_v26 = vpop.permute.xlu0 %223 }
 0x1d2   :  { %v2342_v27 = vadd.f32 %v224_v26, %v216_v25 }
 0x1d4   :  { %2142 = vtanh.f32 %v2342_v27 }
 0x1de   :  { %v2143_v32 = vpop.eup %2142 }
 0x1df   :  { %229 = vrot.lane.b32.xlu1 %v2143_v32, %s2270_s24 }
 0x251   :  { %v230_v33 = vpop.permute.xlu1 %229 }
 0x252   :  { %v232_v34 = vmul.f32 %v2141_v22, %v230_v33 }
 0x254   :  { %v233_v35 = vpack.c.bf16 %v232_v34, %v232_v34 }
 0x256   :  { %239 = vrot.lane.b32.xlu1 %v233_v35, %s2271_s25 }
 0x2c8   :  { %v240_v41 = vpop.permute.xlu1 %239 }
 0x2c9   :  { %1891 = vmatmul.mubr.msk.bf16.vlgmr.msra.gmra.mrb[4].mxu1 %vm164_vm2, %v240_v41  ;;  %1907 = vmatmul.mubr.msk.bf16.vlgmr.msra.gmra.mrb[8].mxu0 %vm164_vm2, %v240_v41 }
 0x2ca   :  { %1895 = vmatpush3.bf16.msra.mxu1 %v2382_v40  ;;  %1898 = vmatprep.mubr.msk.bf16.mxu1 %vm2268_vm0, %v2267_v0 }
 0x2cb   :  { %1896 = vmatprep.subr.bf16.mxu1 %v2267_v0  ;;  %1911 = vmatpush3.bf16.msra.mxu0 %v2354_v30 }
 0x2cc   :  { %1912 = vmatprep.subr.bf16.mxu0 %v2267_v0  ;;  %1914 = vmatprep.mubr.msk.bf16.mxu0 %vm2268_vm0, %v2267_v0 }
 0x2ce   :  { %1897 = vmatpush3.bf16.msra.mxu1 %v2390_v42 }
 0x2cf   :  { %1926 = vmatprep.subr.bf16.mxu1 %v2267_v0  ;;  %1913 = vmatpush3.bf16.msra.mxu0 %v2361_v31 }
 0x2d0   :  { %1918 = vmatprep.subr.bf16.mxu0 %v2267_v0 }
 0x2d5   :  { %1899 = vmatmul.mubr.bf16.vlgmr.msra.gmra.mrb[4].mxu1 %v2269_v6 }
 0x2d6   :  { %1927 = vmatpush3.bf16.msra.mxu1 %v2301_v2  ;;  %1930 = vmatprep.mubr.msk.bf16.mxu1 %vm2268_vm0, %v2267_v0 }
 0x2d7   :  { %1928 = vmatprep.subr.bf16.mxu1 %v2267_v0 }
 0x2da   :  { %1929 = vmatpush3.bf16.msra.mxu1 %v2315_v5 }
 0x2db   :  { %1934 = vmatprep.subr.bf16.mxu1 %v2267_v0 }
 0x39c   :  { %v408_v44 = vpop.f32.mrb[8].mxu0 }
 0x39d   :  { %v414_v45 = vadd.f32 %v408_v44, %v125_v43  ;;  %v1908_v46 = vpop.f32.mrb[9].mxu0 }
 0x39e   :  { %v411_v47 = vpop.f32.mrb[10].mxu0 }
 0x39f   :  { %2144 = vtanh.f32 %v414_v45  ;;  %v1909_v48 = vpop.f32.mrb[11].mxu0  ;;  %v1750_v57 = vmul.f32 -1.442695, %v414_v45 }
 0x3a8   :  { %v342_v50 = vpop.f32.mrb[4].mxu1 }
 0x3a9   :  { %v2145_v51 = vpop.eup %2144  ;;  %v2078_v52 = vadd.f32 %v2415_v49, %v342_v50  ;;  %v1900_v53 = vpop.f32.mrb[5].mxu1 }
 0x3aa   :  { %424 = vrot.lane.b32.xlu0 %v2145_v51, %s2270_s24  ;;  %v345_v54 = vpop.f32.mrb[6].mxu1 }
 0x3ab   :  { %2146 = vtanh.f32 %v2078_v52  ;;  %v1901_v55 = vpop.f32.mrb[7].mxu1  ;;  %v1748_v58 = vmul.f32 -1.442695, %v2078_v52 }
 0x3ac   :  { %2148 = vpow2.f32 %v1750_v57 }
 0x3ad   :  { %2150 = vpow2.f32 %v1748_v58 }
 0x3b5   :  { %v2147_v56 = vpop.eup %2146 }
 0x3b6   :  { %358 = vrot.lane.b32.xlu1 %v2147_v56, %s2270_s24  ;;  %v2149_v59 = vpop.eup %2148 }
 0x3b7   :  { %v418_v60 = vadd.f32 1.0, %v2149_v59  ;;  %v2151_v61 = vpop.eup %2150 }
 0x3b8   :  { %v352_v62 = vadd.f32 1.0, %v2151_v61 }
 0x3b9   :  { %2152 = vrcp.f32 %v418_v60 }
 0x3ba   :  { %2154 = vrcp.f32 %v352_v62 }
 0x3c3   :  { %v2153_v63 = vpop.eup %2152 }
 0x3c4   :  { %v2155_v4 = vpop.eup %2154  ;;  %v422_v10 = vmul.f32 %v2153_v63, %v2342_v27  ;;  %v130_v27 = vadd.f32 %v2333_v8, %v2331_v7 }
 0x3c5   :  { %v356_v14 = vmul.f32 0.0, %v2155_v4 }
 0x41c   :  { %v425_v1 = vpop.permute.xlu0 %424 }
 0x41d   :  { %v427_v3 = vmul.f32 %v2153_v63, %v425_v1 }
 0x41f   :  { %429 = vrot.lane.b32.xlu0 %v427_v3, %s2271_s25 }
 0x428   :  { %v359_v6 = vpop.permute.xlu1 %358 }
 0x429   :  { %v361_v9 = vmul.f32 %v2155_v4, %v359_v6 }
 0x42b   :  { %363 = vrot.lane.b32.xlu1 %v361_v9, %s2271_s25 }
 0x491   :  { %v430_v12 = vpop.permute.xlu0 %429 }
 0x492   :  { %v2423_v13 = vadd.f32 %v430_v12, %v422_v10 }
 0x494   :  { %2156 = vtanh.f32 %v2423_v13 }
 0x49d   :  { %v364_v15 = vpop.permute.xlu1 %363 }
 0x49e   :  { %v2157_v16 = vpop.eup %2156  ;;  %v2426_v17 = vadd.f32 %v364_v15, %v356_v14 }
 0x49f   :  { %435 = vrot.lane.b32.xlu0 %v2157_v16, %s2270_s24 }
 0x4a0   :  { %2158 = vtanh.f32 %v2426_v17 }
 0x4aa   :  { %v2159_v18 = vpop.eup %2158 }
 0x4ab   :  { %369 = vrot.lane.b32.xlu1 %v2159_v18, %s2270_s24  ;;  %v133_v18 = vadd.f32 %v2336_v11, %v2331_v7 }
 0x511   :  { %v436_v19 = vpop.permute.xlu0 %435 }
 0x512   :  { %v438_v20 = vmul.f32 %v2153_v63, %v436_v19 }
 0x514   :  { %v439_v21 = vpack.c.bf16 %v438_v20, %v438_v20 }
 0x516   :  { %441 = vrot.lane.b32.xlu0 %v439_v21, %s2271_s25 }
 0x51d   :  { %v370_v22 = vpop.permute.xlu1 %369 }
 0x51e   :  { %v372_v23 = vmul.f32 %v2155_v4, %v370_v22 }
 0x520   :  { %v373_v24 = vpack.c.bf16 %v372_v23, %v372_v23 }
 0x522   :  { %487 = vrot.lane.b32.xlu1 %v373_v24, %s2271_s25 }
 0x588   :  { %v442_v25 = vpop.permute.xlu0 %441 }
 0x589   :  { %1915 = vmatmul.mubr.msk.bf16.vlgmr.msra.gmra.mrb[12].mxu0 %vm164_vm2, %v442_v25  ;;  %1931 = vmatmul.mubr.msk.bf16.vlgmr.msra.gmra.mrb[8].mxu1 %vm164_vm2, %v442_v25 }
 0x58a   :  { %1919 = vmatpush3.bf16.msra.mxu0 %v2382_v40  ;;  %1922 = vmatprep.mubr.msk.bf16.mxu0 %vm2268_vm0, %v2267_v0 }
 0x58b   :  { %1920 = vmatprep.subr.bf16.mxu0 %v2267_v0  ;;  %1935 = vmatpush3.bf16.msra.mxu1 %v2354_v30 }
 0x58c   :  { %1936 = vmatprep.subr.bf16.mxu1 %v2267_v0  ;;  %1938 = vmatprep.mubr.msk.bf16.mxu1 %vm2268_vm0, %v2267_v0 }
 0x58e   :  { %1921 = vmatpush3.bf16.msra.mxu0 %v2390_v42 }
 0x58f   :  { %1950 = vmatprep.subr.bf16.mxu0 %v2267_v0  ;;  %1937 = vmatpush3.bf16.msra.mxu1 %v2361_v31 }
 0x590   :  { %1942 = vmatprep.subr.bf16.mxu1 %v2267_v0 }
 0x594   :  { %v488_v26 = vpop.permute.xlu1 %487 }
 0x595   :  { %1923 = vmatmul.mubr.msk.bf16.vlgmr.msra.gmra.mrb[12].mxu0 %vm164_vm2, %v488_v26 }
 0x596   :  { %1951 = vmatpush3.bf16.msra.mxu0 %v2301_v2  ;;  %1954 = vmatprep.mubr.msk.bf16.mxu0 %vm2268_vm0, %v2267_v0 }
 0x597   :  { %1952 = vmatprep.subr.bf16.mxu0 %v2267_v0 }
 0x59a   :  { %1953 = vmatpush3.bf16.msra.mxu0 %v2315_v5 }
 0x59b   :  { %1958 = vmatprep.subr.bf16.mxu0 %v2267_v0 }
 0x65c   :  { %v592_v28 = vpop.f32.mrb[8].mxu1 }
 0x65d   :  { %v598_v29 = vadd.f32 %v592_v28, %v130_v27  ;;  %v1932_v32 = vpop.f32.mrb[9].mxu1 }
 0x65e   :  { %v595_v33 = vpop.f32.mrb[10].mxu1 }
 0x65f   :  { %2160 = vtanh.f32 %v598_v29  ;;  %v1933_v34 = vpop.f32.mrb[11].mxu1  ;;  %v1755_v8 = vmul.f32 -1.442695, %v598_v29 }
 0x668   :  { %v526_v35 = vpop.f32.mrb[12].mxu0 }
 0x669   :  { %v2161_v41 = vpop.eup %2160  ;;  %v2079_v43 = vadd.f32 %v2415_v49, %v526_v35  ;;  %v1924_v44 = vpop.f32.mrb[13].mxu0 }
 0x66a   :  { %v529_v45 = vpop.f32.mrb[14].mxu0  ;;  %608 = vrot.lane.b32.xlu0 %v2161_v41, %s2270_s24 }
 0x66b   :  { %2162 = vtanh.f32 %v2079_v43  ;;  %v1925_v46 = vpop.f32.mrb[15].mxu0  ;;  %v1753_v48 = vmul.f32 -1.442695, %v2079_v43 }
 0x66c   :  { %2164 = vpow2.f32 %v1755_v8 }
 0x66d   :  { %2166 = vpow2.f32 %v1753_v48 }
 0x675   :  { %v2163_v47 = vpop.eup %2162 }
 0x676   :  { %542 = vrot.lane.b32.xlu1 %v2163_v47, %s2270_s24  ;;  %v2165_v50 = vpop.eup %2164 }
 0x677   :  { %v602_v51 = vadd.f32 1.0, %v2165_v50  ;;  %v2167_v52 = vpop.eup %2166 }
 0x678   :  { %v536_v53 = vadd.f32 1.0, %v2167_v52 }
 0x679   :  { %2168 = vrcp.f32 %v602_v51 }
 0x67a   :  { %2170 = vrcp.f32 %v536_v53 }
 0x683   :  { %v2169_v54 = vpop.eup %2168 }
 0x684   :  { %v2171_v57 = vpop.eup %2170  ;;  %v606_v60 = vmul.f32 %v2169_v54, %v2423_v13 }
 0x685   :  { %v540_v63 = vmul.f32 %v2171_v57, %v2426_v17 }
 0x6dc   :  { %v609_v55 = vpop.permute.xlu0 %608 }
 0x6dd   :  { %v611_v56 = vmul.f32 %v2169_v54, %v609_v55 }
 0x6df   :  { %613 = vrot.lane.b32.xlu0 %v611_v56, %s2271_s25 }
 0x6e8   :  { %v543_v58 = vpop.permute.xlu1 %542 }
 0x6e9   :  { %v545_v59 = vmul.f32 %v2171_v57, %v543_v58 }
 0x6eb   :  { %547 = vrot.lane.b32.xlu1 %v545_v59, %s2271_s25 }
 0x751   :  { %v614_v61 = vpop.permute.xlu0 %613 }
 0x752   :  { %v2462_v62 = vadd.f32 %v614_v61, %v606_v60 }
 0x754   :  { %2172 = vtanh.f32 %v2462_v62 }
 0x75d   :  { %v548_v1 = vpop.permute.xlu1 %547 }
 0x75e   :  { %v2173_v3 = vpop.eup %2172  ;;  %v2466_v4 = vadd.f32 %v548_v1, %v540_v63 }
 0x75f   :  { %619 = vrot.lane.b32.xlu0 %v2173_v3, %s2270_s24 }
 0x760   :  { %2174 = vtanh.f32 %v2466_v4 }
 0x76a   :  { %v2175_v6 = vpop.eup %2174 }
 0x76b   :  { %553 = vrot.lane.b32.xlu1 %v2175_v6, %s2270_s24 }
 0x7d1   :  { %v620_v9 = vpop.permute.xlu0 %619 }
 0x7d2   :  { %v622_v10 = vmul.f32 %v2169_v54, %v620_v9 }
 0x7d4   :  { %v623_v12 = vpack.c.bf16 %v622_v10, %v622_v10 }
 0x7d6   :  { %625 = vrot.lane.b32.xlu0 %v623_v12, %s2271_s25 }
 0x7dd   :  { %v554_v13 = vpop.permute.xlu1 %553 }
 0x7de   :  { %v556_v14 = vmul.f32 %v2171_v57, %v554_v13 }
 0x7e0   :  { %v557_v15 = vpack.c.bf16 %v556_v14, %v556_v14 }
 0x7e2   :  { %671 = vrot.lane.b32.xlu1 %v557_v15, %s2271_s25 }
 0x848   :  { %v626_v16 = vpop.permute.xlu0 %625 }
 0x849   :  { %1939 = vmatmul.mubr.msk.bf16.vlgmr.msra.gmra.mrb[12].mxu1 %vm164_vm2, %v626_v16  ;;  %1955 = vmatmul.mubr.msk.bf16.vlgmr.msra.gmra.mrb[16].mxu0 %vm164_vm2, %v626_v16 }
 0x84a   :  { %1943 = vmatpush3.bf16.msra.mxu1 %v2382_v40  ;;  %1946 = vmatprep.mubr.msk.bf16.mxu1 %vm2268_vm0, %v2267_v0 }
 0x84b   :  { %1944 = vmatprep.subr.bf16.mxu1 %v2267_v0  ;;  %1959 = vmatpush3.bf16.msra.mxu0 %v2354_v30 }
 0x84c   :  { %1960 = vmatprep.subr.bf16.mxu0 %v2267_v0  ;;  %1962 = vmatprep.mubr.msk.bf16.mxu0 %vm2268_vm0, %v2267_v0 }
 0x84e   :  { %1945 = vmatpush3.bf16.msra.mxu1 %v2390_v42 }
 0x84f   :  { %1974 = vmatprep.subr.bf16.mxu1 %v2267_v0  ;;  %1961 = vmatpush3.bf16.msra.mxu0 %v2361_v31 }
 0x850   :  { %1966 = vmatprep.subr.bf16.mxu0 %v2267_v0 }
 0x854   :  { %v672_v17 = vpop.permute.xlu1 %671 }
 0x855   :  { %1947 = vmatmul.mubr.msk.bf16.vlgmr.msra.gmra.mrb[12].mxu1 %vm164_vm2, %v672_v17 }
 0x856   :  { %1975 = vmatpush3.bf16.msra.mxu1 %v2301_v2  ;;  %1978 = vmatprep.mubr.msk.bf16.mxu1 %vm2268_vm0, %v2267_v0 }
 0x857   :  { %1976 = vmatprep.subr.bf16.mxu1 %v2267_v0 }
 0x85a   :  { %1977 = vmatpush3.bf16.msra.mxu1 %v2315_v5 }
 0x85b   :  { %1982 = vmatprep.subr.bf16.mxu1 %v2267_v0 }
 0x91c   :  { %v776_v19 = vpop.f32.mrb[16].mxu0 }
 0x91d   :  { %v782_v20 = vadd.f32 %v776_v19, %v133_v18  ;;  %v1956_v21 = vpop.f32.mrb[17].mxu0 }
 0x91e   :  { %v779_v22 = vpop.f32.mrb[18].mxu0 }
 0x91f   :  { %2176 = vtanh.f32 %v782_v20  ;;  %v1957_v23 = vpop.f32.mrb[19].mxu0  ;;  %v1760_v11 = vmul.f32 -1.442695, %v782_v20 }
 0x928   :  { %v710_v24 = vpop.f32.mrb[12].mxu1 }
 0x929   :  { %v2177_v25 = vpop.eup %2176  ;;  %v2080_v26 = vadd.f32 %v2415_v49, %v710_v24  ;;  %v1948_v27 = vpop.f32.mrb[13].mxu1 }
 0x92a   :  { %792 = vrot.lane.b32.xlu0 %v2177_v25, %s2270_s24  ;;  %v713_v28 = vpop.f32.mrb[14].mxu1 }
 0x92b   :  { %2178 = vtanh.f32 %v2080_v26  ;;  %v1949_v29 = vpop.f32.mrb[15].mxu1  ;;  %v1758_v33 = vmul.f32 -1.442695, %v2080_v26 }
 0x92c   :  { %2180 = vpow2.f32 %v1760_v11 }
 0x92d   :  { %2182 = vpow2.f32 %v1758_v33 }
 0x935   :  { %v2179_v32 = vpop.eup %2178 }
 0x936   :  { %726 = vrot.lane.b32.xlu1 %v2179_v32, %s2270_s24  ;;  %v2181_v34 = vpop.eup %2180 }
 0x937   :  { %v786_v35 = vadd.f32 1.0, %v2181_v34  ;;  %v2183_v41 = vpop.eup %2182 }
 0x938   :  { %v720_v43 = vadd.f32 1.0, %v2183_v41 }
 0x939   :  { %2184 = vrcp.f32 %v786_v35 }
 0x93a   :  { %2186 = vrcp.f32 %v720_v43 }
 0x943   :  { %v2185_v44 = vpop.eup %2184 }
 0x944   :  { %v2187_v47 = vpop.eup %2186  ;;  %v790_v50 = vmul.f32 %v2185_v44, %v2462_v62 }
 0x945   :  { %v724_v53 = vmul.f32 %v2187_v47, %v2466_v4  ;;  %v138_v4 = vadd.f32 %v2331_v7, %v2373_v37 }
 0x99c   :  { %v793_v45 = vpop.permute.xlu0 %792 }
 0x99d   :  { %v795_v46 = vmul.f32 %v2185_v44, %v793_v45 }
 0x99f   :  { %797 = vrot.lane.b32.xlu0 %v795_v46, %s2271_s25 }
 0x9a8   :  { %v727_v8 = vpop.permute.xlu1 %726 }
 0x9a9   :  { %v729_v48 = vmul.f32 %v2187_v47, %v727_v8 }
 0x9ab   :  { %731 = vrot.lane.b32.xlu1 %v729_v48, %s2271_s25 }
 0xa11   :  { %v798_v51 = vpop.permute.xlu0 %797 }
 0xa12   :  { %v2502_v52 = vadd.f32 %v798_v51, %v790_v50 }
 0xa14   :  { %2188 = vtanh.f32 %v2502_v52 }
 0xa1d   :  { %v732_v54 = vpop.permute.xlu1 %731 }
 0xa1e   :  { %v2189_v55 = vpop.eup %2188  ;;  %v2506_v56 = vadd.f32 %v732_v54, %v724_v53 }
 0xa1f   :  { %803 = vrot.lane.b32.xlu0 %v2189_v55, %s2270_s24  ;;  %v141_v55 = vadd.f32 %v2331_v7, %v2377_v39 }
 0xa20   :  { %2190 = vtanh.f32 %v2506_v56 }
 0xa2a   :  { %v2191_v57 = vpop.eup %2190 }
 0xa2b   :  { %737 = vrot.lane.b32.xlu1 %v2191_v57, %s2270_s24 }
 0xa91   :  { %v804_v58 = vpop.permute.xlu0 %803 }
 0xa92   :  { %v806_v59 = vmul.f32 %v2185_v44, %v804_v58 }
 0xa94   :  { %v807_v60 = vpack.c.bf16 %v806_v59, %v806_v59 }
 0xa96   :  { %809 = vrot.lane.b32.xlu0 %v807_v60, %s2271_s25 }
 0xa9d   :  { %v738_v61 = vpop.permute.xlu1 %737 }
 0xa9e   :  { %v740_v62 = vmul.f32 %v2187_v47, %v738_v61 }
 0xaa0   :  { %v741_v63 = vpack.c.bf16 %v740_v62, %v740_v62 }
 0xaa2   :  { %855 = vrot.lane.b32.xlu1 %v741_v63, %s2271_s25 }
 0xb08   :  { %v810_v1 = vpop.permute.xlu0 %809 }
 0xb09   :  { %1963 = vmatmul.mubr.msk.bf16.vlgmr.msra.gmra.mrb[20].mxu0 %vm164_vm2, %v810_v1  ;;  %1979 = vmatmul.mubr.msk.bf16.vlgmr.msra.gmra.mrb[16].mxu1 %vm164_vm2, %v810_v1 }
 0xb0a   :  { %1967 = vmatpush3.bf16.msra.mxu0 %v2382_v40  ;;  %1970 = vmatprep.mubr.msk.bf16.mxu0 %vm2268_vm0, %v2267_v0 }
 0xb0b   :  { %1968 = vmatprep.subr.bf16.mxu0 %v2267_v0  ;;  %1983 = vmatpush3.bf16.msra.mxu1 %v2354_v30 }
 0xb0c   :  { %1984 = vmatprep.subr.bf16.mxu1 %v2267_v0  ;;  %1986 = vmatprep.mubr.msk.bf16.mxu1 %vm2268_vm0, %v2267_v0 }
 0xb0e   :  { %1969 = vmatpush3.bf16.msra.mxu0 %v2390_v42 }
 0xb0f   :  { %1998 = vmatprep.subr.bf16.mxu0 %v2267_v0  ;;  %1985 = vmatpush3.bf16.msra.mxu1 %v2361_v31 }
 0xb10   :  { %1990 = vmatprep.subr.bf16.mxu1 %v2267_v0 }
 0xb14   :  { %v856_v3 = vpop.permute.xlu1 %855 }
 0xb15   :  { %1971 = vmatmul.mubr.msk.bf16.vlgmr.msra.gmra.mrb[20].mxu0 %vm164_vm2, %v856_v3 }
 0xb16   :  { %1999 = vmatpush3.bf16.msra.mxu0 %v2301_v2  ;;  %2002 = vmatprep.mubr.msk.bf16.mxu0 %vm2268_vm0, %v2267_v0 }
 0xb17   :  { %2000 = vmatprep.subr.bf16.mxu0 %v2267_v0 }
 0xb1a   :  { %2001 = vmatpush3.bf16.msra.mxu0 %v2315_v5 }
 0xb1b   :  { %2006 = vmatprep.subr.bf16.mxu0 %v2267_v0 }
 0xbdc   :  { %v960_v6 = vpop.f32.mrb[16].mxu1 }
 0xbdd   :  { %v966_v9 = vadd.f32 %v960_v6, %v138_v4  ;;  %v1980_v10 = vpop.f32.mrb[17].mxu1 }
 0xbde   :  { %v963_v12 = vpop.f32.mrb[18].mxu1 }
 0xbdf   :  { %2192 = vtanh.f32 %v966_v9  ;;  %v1981_v13 = vpop.f32.mrb[19].mxu1  ;;  %v1765_v37 = vmul.f32 -1.442695, %v966_v9 }
 0xbe8   :  { %v894_v14 = vpop.f32.mrb[20].mxu0 }
 0xbe9   :  { %v2193_v15 = vpop.eup %2192  ;;  %v2081_v16 = vadd.f32 %v2415_v49, %v894_v14  ;;  %v1972_v17 = vpop.f32.mrb[21].mxu0 }
 0xbea   :  { %v897_v18 = vpop.f32.mrb[22].mxu0  ;;  %976 = vrot.lane.b32.xlu0 %v2193_v15, %s2270_s24 }
 0xbeb   :  { %2194 = vtanh.f32 %v2081_v16  ;;  %v1973_v19 = vpop.f32.mrb[23].mxu0  ;;  %v1763_v21 = vmul.f32 -1.442695, %v2081_v16 }
 0xbec   :  { %2196 = vpow2.f32 %v1765_v37 }
 0xbed   :  { %2198 = vpow2.f32 %v1763_v21 }
 0xbf5   :  { %v2195_v20 = vpop.eup %2194 }
 0xbf6   :  { %910 = vrot.lane.b32.xlu1 %v2195_v20, %s2270_s24  ;;  %v2197_v22 = vpop.eup %2196 }
 0xbf7   :  { %v970_v23 = vadd.f32 1.0, %v2197_v22  ;;  %v2199_v24 = vpop.eup %2198 }
 0xbf8   :  { %v904_v25 = vadd.f32 1.0, %v2199_v24 }
 0xbf9   :  { %2200 = vrcp.f32 %v970_v23 }
 0xbfa   :  { %2202 = vrcp.f32 %v904_v25 }
 0xc03   :  { %v2201_v26 = vpop.eup %2200 }
 0xc04   :  { %v2203_v29 = vpop.eup %2202  ;;  %v974_v33 = vmul.f32 %v2201_v26, %v2502_v52 }
 0xc05   :  { %v908_v41 = vmul.f32 %v2203_v29, %v2506_v56 }
 0xc5c   :  { %v977_v27 = vpop.permute.xlu0 %976 }
 0xc5d   :  { %v979_v28 = vmul.f32 %v2201_v26, %v977_v27 }
 0xc5f   :  { %981 = vrot.lane.b32.xlu0 %v979_v28, %s2271_s25 }
 0xc68   :  { %v911_v32 = vpop.permute.xlu1 %910 }
 0xc69   :  { %v913_v11 = vmul.f32 %v2203_v29, %v911_v32 }
 0xc6b   :  { %915 = vrot.lane.b32.xlu1 %v913_v11, %s2271_s25 }
 0xcd1   :  { %v982_v34 = vpop.permute.xlu0 %981 }
 0xcd2   :  { %v2542_v35 = vadd.f32 %v982_v34, %v974_v33 }
 0xcd4   :  { %2204 = vtanh.f32 %v2542_v35 }
 0xcdd   :  { %v916_v43 = vpop.permute.xlu1 %915 }
 0xcde   :  { %v2205_v44 = vpop.eup %2204  ;;  %v2546_v45 = vadd.f32 %v916_v43, %v908_v41  ;;  %v146_v43 = vadd.f32 %v2371_v36, %v2331_v7 }
 0xcdf   :  { %987 = vrot.lane.b32.xlu0 %v2205_v44, %s2270_s24 }
 0xce0   :  { %2206 = vtanh.f32 %v2546_v45 }
 0xcea   :  { %v2207_v46 = vpop.eup %2206 }
 0xceb   :  { %921 = vrot.lane.b32.xlu1 %v2207_v46, %s2270_s24 }
 0xd51   :  { %v988_v47 = vpop.permute.xlu0 %987 }
 0xd52   :  { %v990_v8 = vmul.f32 %v2201_v26, %v988_v47 }
 0xd54   :  { %v991_v48 = vpack.c.bf16 %v990_v8, %v990_v8 }
 0xd56   :  { %993 = vrot.lane.b32.xlu0 %v991_v48, %s2271_s25 }
 0xd5d   :  { %v922_v50 = vpop.permute.xlu1 %921 }
 0xd5e   :  { %v924_v51 = vmul.f32 %v2203_v29, %v922_v50 }
 0xd60   :  { %v925_v52 = vpack.c.bf16 %v924_v51, %v924_v51 }
 0xd62   :  { %1039 = vrot.lane.b32.xlu1 %v925_v52, %s2271_s25 }
 0xdc8   :  { %v994_v53 = vpop.permute.xlu0 %993 }
 0xdc9   :  { %1987 = vmatmul.mubr.msk.bf16.vlgmr.msra.gmra.mrb[20].mxu1 %vm164_vm2, %v994_v53  ;;  %2003 = vmatmul.mubr.msk.bf16.vlgmr.msra.gmra.mrb[24].mxu0 %vm164_vm2, %v994_v53 }
 0xdca   :  { %1991 = vmatpush3.bf16.msra.mxu1 %v2382_v40  ;;  %1994 = vmatprep.mubr.msk.bf16.mxu1 %vm2268_vm0, %v2267_v0 }
 0xdcb   :  { %1992 = vmatprep.subr.bf16.mxu1 %v2267_v0  ;;  %2007 = vmatpush3.bf16.msra.mxu0 %v2354_v30 }
 0xdcc   :  { %2008 = vmatprep.subr.bf16.mxu0 %v2267_v0  ;;  %2010 = vmatprep.mubr.msk.bf16.mxu0 %vm2268_vm0, %v2267_v0 }
 0xdce   :  { %1993 = vmatpush3.bf16.msra.mxu1 %v2390_v42 }
 0xdcf   :  { %2022 = vmatprep.subr.bf16.mxu1 %v2267_v0  ;;  %2009 = vmatpush3.bf16.msra.mxu0 %v2361_v31 }
 0xdd0   :  { %2014 = vmatprep.subr.bf16.mxu0 %v2267_v0 }
 0xdd4   :  { %v1040_v54 = vpop.permute.xlu1 %1039 }
 0xdd5   :  { %1995 = vmatmul.mubr.msk.bf16.vlgmr.msra.gmra.mrb[20].mxu1 %vm164_vm2, %v1040_v54 }
 0xdd6   :  { %2023 = vmatpush3.bf16.msra.mxu1 %v2301_v2  ;;  %2026 = vmatprep.mubr.msk.bf16.mxu1 %vm2268_vm0, %v2267_v0 }
 0xdd7   :  { %2024 = vmatprep.subr.bf16.mxu1 %v2267_v0 }
 0xdda   :  { %2025 = vmatpush3.bf16.msra.mxu1 %v2315_v5 }
 0xddb   :  { %2030 = vmatprep.subr.bf16.mxu1 %v2267_v0 }
 0xe9c   :  { %v1144_v56 = vpop.f32.mrb[24].mxu0 }
 0xe9d   :  { %v1150_v57 = vadd.f32 %v1144_v56, %v141_v55  ;;  %v2004_v58 = vpop.f32.mrb[25].mxu0 }
 0xe9e   :  { %v1147_v59 = vpop.f32.mrb[26].mxu0 }
 0xe9f   :  { %2208 = vtanh.f32 %v1150_v57  ;;  %v2005_v60 = vpop.f32.mrb[27].mxu0  ;;  %v1770_v39 = vmul.f32 -1.442695, %v1150_v57 }
 0xea8   :  { %v1078_v61 = vpop.f32.mrb[20].mxu1 }
 0xea9   :  { %v2209_v62 = vpop.eup %2208  ;;  %v2082_v63 = vadd.f32 %v2415_v49, %v1078_v61  ;;  %v1996_v1 = vpop.f32.mrb[21].mxu1 }
 0xeaa   :  { %1160 = vrot.lane.b32.xlu0 %v2209_v62, %s2270_s24  ;;  %v1081_v3 = vpop.f32.mrb[22].mxu1 }
 0xeab   :  { %2210 = vtanh.f32 %v2082_v63  ;;  %v1997_v4 = vpop.f32.mrb[23].mxu1  ;;  %v1768_v9 = vmul.f32 -1.442695, %v2082_v63 }
 0xeac   :  { %2212 = vpow2.f32 %v1770_v39 }
 0xead   :  { %2214 = vpow2.f32 %v1768_v9 }
 0xeb5   :  { %v2211_v6 = vpop.eup %2210 }
 0xeb6   :  { %1094 = vrot.lane.b32.xlu1 %v2211_v6, %s2270_s24  ;;  %v2213_v10 = vpop.eup %2212 }
 0xeb7   :  { %v1154_v12 = vadd.f32 1.0, %v2213_v10  ;;  %v2215_v13 = vpop.eup %2214 }
 0xeb8   :  { %v1088_v14 = vadd.f32 1.0, %v2215_v13 }
 0xeb9   :  { %2216 = vrcp.f32 %v1154_v12 }
 0xeba   :  { %2218 = vrcp.f32 %v1088_v14 }
 0xec3   :  { %v2217_v15 = vpop.eup %2216 }
 0xec4   :  { %v2219_v18 = vpop.eup %2218  ;;  %v1158_v37 = vmul.f32 %v2217_v15, %v2542_v35 }
 0xec5   :  { %v1092_v23 = vmul.f32 %v2219_v18, %v2546_v45 }
 0xf1c   :  { %v1161_v16 = vpop.permute.xlu0 %1160 }
 0xf1d   :  { %v1163_v17 = vmul.f32 %v2217_v15, %v1161_v16 }
 0xf1f   :  { %1165 = vrot.lane.b32.xlu0 %v1163_v17, %s2271_s25 }
 0xf28   :  { %v1095_v19 = vpop.permute.xlu1 %1094 }
 0xf29   :  { %v1097_v20 = vmul.f32 %v2219_v18, %v1095_v19 }
 0xf2b   :  { %1099 = vrot.lane.b32.xlu1 %v1097_v20, %s2271_s25 }
 0xf91   :  { %v1166_v21 = vpop.permute.xlu0 %1165 }
 0xf92   :  { %v2582_v22 = vadd.f32 %v1166_v21, %v1158_v37 }
 0xf94   :  { %2220 = vtanh.f32 %v2582_v22 }
 0xf9d   :  { %v1100_v24 = vpop.permute.xlu1 %1099 }
 0xf9e   :  { %v2221_v25 = vpop.eup %2220  ;;  %v2586_v26 = vadd.f32 %v1100_v24, %v1092_v23 }
 0xf9f   :  { %1171 = vrot.lane.b32.xlu0 %v2221_v25, %s2270_s24 }
 0xfa0   :  { %2222 = vtanh.f32 %v2586_v26 }
 0xfaa   :  { %v2223_v27 = vpop.eup %2222 }
 0xfab   :  { %1105 = vrot.lane.b32.xlu1 %v2223_v27, %s2270_s24 }
0x1011   :  { %v1172_v28 = vpop.permute.xlu0 %1171 }
0x1012   :  { %v1174_v29 = vmul.f32 %v2217_v15, %v1172_v28 }
0x1014   :  { %v1175_v32 = vpack.c.bf16 %v1174_v29, %v1174_v29 }
0x1016   :  { %1177 = vrot.lane.b32.xlu0 %v1175_v32, %s2271_s25 }
0x101d   :  { %v1106_v11 = vpop.permute.xlu1 %1105 }
0x101e   :  { %v1108_v33 = vmul.f32 %v2219_v18, %v1106_v11 }
0x1020   :  { %v1109_v34 = vpack.c.bf16 %v1108_v33, %v1108_v33 }
0x1022   :  { %1223 = vrot.lane.b32.xlu1 %v1109_v34, %s2271_s25 }
0x1088   :  { %v1178_v35 = vpop.permute.xlu0 %1177 }
0x1089   :  { %2011 = vmatmul.mubr.msk.bf16.vlgmr.msra.gmra.mrb[28].mxu0 %vm164_vm2, %v1178_v35  ;;  %2027 = vmatmul.mubr.msk.bf16.vlgmr.msra.gmra.mrb[24].mxu1 %vm164_vm2, %v1178_v35 }
0x108a   :  { %2015 = vmatpush3.bf16.msra.mxu0 %v2382_v40  ;;  %2018 = vmatprep.mubr.msk.bf16.mxu0 %vm2268_vm0, %v2267_v0 }
0x108b   :  { %2016 = vmatprep.subr.bf16.mxu0 %v2267_v0  ;;  %2031 = vmatpush3.bf16.msra.mxu1 %v2354_v30 }
0x108c   :  { %2032 = vmatprep.subr.bf16.mxu1 %v2267_v0  ;;  %2034 = vmatprep.mubr.msk.bf16.mxu1 %vm2268_vm0, %v2267_v0 }
0x108e   :  { %2017 = vmatpush3.bf16.msra.mxu0 %v2390_v42 }
0x108f   :  { %2046 = vmatprep.subr.bf16.mxu0 %v2267_v0  ;;  %2033 = vmatpush3.bf16.msra.mxu1 %v2361_v31 }
0x1090   :  { %2038 = vmatprep.subr.bf16.mxu1 %v2267_v0 }
0x1094   :  { %v1224_v41 = vpop.permute.xlu1 %1223 }
0x1095   :  { %2019 = vmatmul.mubr.msk.bf16.vlgmr.msra.gmra.mrb[28].mxu0 %vm164_vm2, %v1224_v41 }
0x1096   :  { %2047 = vmatpush3.bf16.msra.mxu0 %v2301_v2  ;;  %2050 = vmatprep.mubr.msk.bf16.mxu0 %vm2268_vm0, %v2267_v0 }
0x1097   :  { %2048 = vmatprep.subr.bf16.mxu0 %v2267_v0 }
0x109a   :  { %2049 = vmatpush3.bf16.msra.mxu0 %v2315_v5 }
0x109b   :  { %2054 = vmatprep.subr.bf16.mxu0 %v2267_v0 }
0x115c   :  { %v1328_v44 = vpop.f32.mrb[24].mxu1 }
0x115d   :  { %v1334_v45 = vadd.f32 %v1328_v44, %v146_v43  ;;  %v2028_v46 = vpop.f32.mrb[25].mxu1 }
0x115e   :  { %v1331_v47 = vpop.f32.mrb[26].mxu1 }
0x115f   :  { %2224 = vtanh.f32 %v1334_v45  ;;  %v2029_v8 = vpop.f32.mrb[27].mxu1  ;;  %v1775_v7 = vmul.f32 -1.442695, %v1334_v45 }
0x1168   :  { %v1262_v48 = vpop.f32.mrb[28].mxu0 }
0x1169   :  { %v2225_v2 = vpop.eup %2224  ;;  %v2083_v50 = vadd.f32 %v2415_v49, %v1262_v48  ;;  %v2020_v51 = vpop.f32.mrb[29].mxu0 }
0x116a   :  { %v1265_v52 = vpop.f32.mrb[30].mxu0  ;;  %1344 = vrot.lane.b32.xlu0 %v2225_v2, %s2270_s24 }
0x116b   :  { %2226 = vtanh.f32 %v2083_v50  ;;  %v2021_v5 = vpop.f32.mrb[31].mxu0  ;;  %v1773_v36 = vmul.f32 -1.442695, %v2083_v50 }
0x116c   :  { %2228 = vpow2.f32 %v1775_v7 }
0x116d   :  { %2230 = vpow2.f32 %v1773_v36 }
0x1175   :  { %v2227_v53 = vpop.eup %2226 }
0x1176   :  { %1278 = vrot.lane.b32.xlu1 %v2227_v53, %s2270_s24  ;;  %v2229_v54 = vpop.eup %2228 }
0x1177   :  { %v1338_v55 = vadd.f32 1.0, %v2229_v54  ;;  %v2231_v56 = vpop.eup %2230 }
0x1178   :  { %v1272_v57 = vadd.f32 1.0, %v2231_v56 }
0x1179   :  { %2232 = vrcp.f32 %v1338_v55 }
0x117a   :  { %2234 = vrcp.f32 %v1272_v57 }
0x1183   :  { %v2233_v58 = vpop.eup %2232 }
0x1184   :  { %v2235_v61 = vpop.eup %2234  ;;  %v1342_v1 = vmul.f32 %v2233_v58, %v2582_v22 }
0x1185   :  { %v1276_v6 = vmul.f32 %v2235_v61, %v2586_v26 }
0x11dc   :  { %v1345_v59 = vpop.permute.xlu0 %1344 }
0x11dd   :  { %v1347_v60 = vmul.f32 %v2233_v58, %v1345_v59  ;;  %v2265_v59 = vld [vmem:[%s2695_s1 + $0x28] sm:$0xff]  }
0x11df   :  { %1349 = vrot.lane.b32.xlu0 %v1347_v60, %s2271_s25  ;;  %v2266_v60 = vld [vmem:[%s2695_s1 + $0x30] sm:$0xff]  }
0x11e8   :  { %v1279_v62 = vpop.permute.xlu1 %1278 }
0x11e9   :  { %v1281_v63 = vmul.f32 %v2235_v61, %v1279_v62 }
0x11eb   :  { %1283 = vrot.lane.b32.xlu1 %v1281_v63, %s2271_s25 }
0x1251   :  { %v1350_v3 = vpop.permute.xlu0 %1349 }
0x1252   :  { %v2622_v4 = vadd.f32 %v1350_v3, %v1342_v1 }
0x1254   :  { %2236 = vtanh.f32 %v2622_v4 }
0x125d   :  { %v1284_v39 = vpop.permute.xlu1 %1283 }
0x125e   :  { %v2237_v9 = vpop.eup %2236  ;;  %v2626_v10 = vadd.f32 %v1284_v39, %v1276_v6 }
0x125f   :  { %1355 = vrot.lane.b32.xlu0 %v2237_v9, %s2270_s24 }
0x1260   :  { %2238 = vtanh.f32 %v2626_v10 }
0x126a   :  { %v2239_v12 = vpop.eup %2238 }
0x126b   :  { %1289 = vrot.lane.b32.xlu1 %v2239_v12, %s2270_s24 }
0x12d1   :  { %v1356_v13 = vpop.permute.xlu0 %1355 }
0x12d2   :  { %v1358_v14 = vmul.f32 %v2233_v58, %v1356_v13 }
0x12d4   :  { %v1359_v15 = vpack.c.bf16 %v1358_v14, %v1358_v14 }
0x12d6   :  { %1361 = vrot.lane.b32.xlu0 %v1359_v15, %s2271_s25 }
0x12dd   :  { %v1290_v16 = vpop.permute.xlu1 %1289 }
0x12de   :  { %v1292_v17 = vmul.f32 %v2235_v61, %v1290_v16 }
0x12e0   :  { %v1293_v18 = vpack.c.bf16 %v1292_v17, %v1292_v17  ;;  %v2134_v17 = vld [vmem:[%s2695_s1 + $0x38] sm:$0xff]  }
0x12e2   :  { %1407 = vrot.lane.b32.xlu1 %v1293_v18, %s2271_s25  ;;  %v2135_v18 = vld [vmem:[%s2695_s1 + $0x40] sm:$0xff]  }
0x1348   :  { %v1362_v19 = vpop.permute.xlu0 %1361 }
0x1349   :  { %2035 = vmatmul.mubr.msk.bf16.vlgmr.msra.gmra.mrb[28].mxu1 %vm164_vm2, %v1362_v19  ;;  %2051 = vmatmul.mubr.msk.bf16.vlgmr.msra.gmra.mrb[32].mxu0 %vm164_vm2, %v1362_v19 }
0x134a   :  { %2039 = vmatpush3.bf16.msra.mxu1 %v2382_v40  ;;  %2042 = vmatprep.mubr.msk.bf16.mxu1 %vm2268_vm0, %v2267_v0 }
0x134b   :  { %2040 = vmatprep.subr.bf16.mxu1 %v2267_v0  ;;  %2055 = vmatpush3.bf16.msra.mxu0 %v2354_v30  ;;  %v2264_v30 = vld [vmem:[%s2697_s2] ss:$0 sm:$0xff] }
0x134c   :  { %2056 = vmatprep.subr.bf16.mxu0 %v2267_v0  ;;  %2058 = vmatprep.mubr.msk.bf16.mxu0 %vm2268_vm0, %v2267_v0  ;;  %v149_v20 = vadd.f32 %v2264_v30, %v2375_v38 }
0x134e   :  { %2041 = vmatpush3.bf16.msra.mxu1 %v2390_v42 }
0x134f   :  { %2057 = vmatpush3.bf16.msra.mxu0 %v2361_v31  ;;  %2070 = vmatprep.subr.bf16.mxu1 %v2267_v0 }
0x1350   :  { %2062 = vmatprep.subr.bf16.mxu0 %v2267_v0 }
0x1354   :  { %v1408_v40 = vpop.permute.xlu1 %1407 }
0x1355   :  { %2043 = vmatmul.mubr.msk.bf16.vlgmr.msra.gmra.mrb[28].mxu1 %vm164_vm2, %v1408_v40 }
0x1356   :  { %2074 = vmatprep.mubr.msk.bf16.mxu1 %vm2268_vm0, %v2267_v0  ;;  %2071 = vmatpush3.bf16.msra.mxu1 %v2134_v17 }
0x1357   :  { %2072 = vmatprep.subr.bf16.mxu1 %v2267_v0 }
0x135a   :  { %2073 = vmatpush3.bf16.msra.mxu1 %v2135_v18 }
0x141c   :  { %v1512_v37 = vpop.f32.mrb[32].mxu0 }
0x141d   :  { %v1518_v42 = vadd.f32 %v1512_v37, %v149_v20  ;;  %v2052_v21 = vpop.f32.mrb[33].mxu0 }
0x141e   :  { %v1515_v31 = vpop.f32.mrb[34].mxu0 }
0x141f   :  { %2240 = vtanh.f32 %v1518_v42  ;;  %v2053_v22 = vpop.f32.mrb[35].mxu0  ;;  %v1780_v38 = vmul.f32 -1.442695, %v1518_v42  ;;  %v1784_v42 = vld [vmem:[%s2697_s2 + $0x2] ss:$0 sm:$0xff] }
0x1428   :  { %v1446_v23 = vpop.f32.mrb[28].mxu1 }
0x1429   :  { %v2241_v24 = vpop.eup %2240  ;;  %v2084_v25 = vadd.f32 %v2415_v49, %v1446_v23  ;;  %v2044_v26 = vpop.f32.mrb[29].mxu1 }
0x142a   :  { %1528 = vrot.lane.b32.xlu0 %v2241_v24, %s2270_s24  ;;  %v1449_v27 = vpop.f32.mrb[30].mxu1 }
0x142b   :  { %2242 = vtanh.f32 %v2084_v25  ;;  %v2045_v28 = vpop.f32.mrb[31].mxu1  ;;  %v1778_v32 = vmul.f32 -1.442695, %v2084_v25 }
0x142c   :  { %2244 = vpow2.f32 %v1780_v38 }
0x142d   :  { %2246 = vpow2.f32 %v1778_v32 }
0x1435   :  { %v2243_v29 = vpop.eup %2242 }
0x1436   :  { %1462 = vrot.lane.b32.xlu1 %v2243_v29, %s2270_s24  ;;  %v2245_v11 = vpop.eup %2244 }
0x1437   :  { %v1522_v33 = vadd.f32 1.0, %v2245_v11  ;;  %v2247_v34 = vpop.eup %2246 }
0x1438   :  { %v1456_v35 = vadd.f32 1.0, %v2247_v34 }
0x1439   :  { %2248 = vrcp.f32 %v1522_v33 }
0x143a   :  { %2250 = vrcp.f32 %v1456_v35 }
0x1443   :  { %v2249_v41 = vpop.eup %2248 }
0x1444   :  { %v2251_v45 = vpop.eup %2250  ;;  %v1526_v8 = vmul.f32 %v2249_v41, %v2622_v4 }
0x1445   :  { %v1460_v50 = vmul.f32 %v2251_v45, %v2626_v10 }
0x149c   :  { %v1529_v43 = vpop.permute.xlu0 %1528 }
0x149d   :  { %v1531_v44 = vmul.f32 %v2249_v41, %v1529_v43 }
0x149f   :  { %1533 = vrot.lane.b32.xlu0 %v1531_v44, %s2271_s25 }
0x14a8   :  { %v1463_v46 = vpop.permute.xlu1 %1462 }
0x14a9   :  { %v1465_v47 = vmul.f32 %v2251_v45, %v1463_v46 }
0x14ab   :  { %1467 = vrot.lane.b32.xlu1 %v1465_v47, %s2271_s25 }
0x1511   :  { %v1534_v48 = vpop.permute.xlu0 %1533 }
0x1512   :  { %v1536_v2 = vadd.f32 %v1534_v48, %v1526_v8 }
0x1514   :  { %2252 = vtanh.f32 %v1536_v2 }
0x151d   :  { %v1468_v51 = vpop.permute.xlu1 %1467 }
0x151e   :  { %v2253_v52 = vpop.eup %2252  ;;  %v1470_v5 = vadd.f32 %v1468_v51, %v1460_v50 }
0x151f   :  { %1539 = vrot.lane.b32.xlu0 %v2253_v52, %s2270_s24 }
0x1520   :  { %2254 = vtanh.f32 %v1470_v5 }
0x152a   :  { %v2255_v53 = vpop.eup %2254 }
0x152b   :  { %1473 = vrot.lane.b32.xlu1 %v2255_v53, %s2270_s24 }
0x1591   :  { %v1540_v7 = vpop.permute.xlu0 %1539 }
0x1592   :  { %v1542_v36 = vmul.f32 %v2249_v41, %v1540_v7 }
0x1594   :  { %v1543_v54 = vpack.c.bf16 %v1542_v36, %v1542_v36 }
0x1596   :  { %1545 = vrot.lane.b32.xlu0 %v1543_v54, %s2271_s25 }
0x159d   :  { %v1474_v55 = vpop.permute.xlu1 %1473 }
0x159e   :  { %v1476_v56 = vmul.f32 %v2251_v45, %v1474_v55 }
0x15a0   :  { %v1477_v57 = vpack.c.bf16 %v1476_v56, %v1476_v56 }
0x15a2   :  { %1591 = vrot.lane.b32.xlu1 %v1477_v57, %s2271_s25 }
0x1608   :  { %v1546_v58 = vpop.permute.xlu0 %1545 }
0x1609   :  { %2059 = vmatmul.mubr.msk.bf16.vlgmr.msra.gmra.mrb[36].mxu0 %vm164_vm2, %v1546_v58 }
0x160a   :  { %2063 = vmatpush3.bf16.msra.mxu0 %v2265_v59  ;;  %2066 = vmatprep.mubr.msk.bf16.mxu0 %vm2268_vm0, %v2267_v0 }
0x160b   :  { %2064 = vmatprep.subr.bf16.mxu0 %v2267_v0 }
0x160e   :  { %2065 = vmatpush3.bf16.msra.mxu0 %v2266_v60 }
0x1614   :  { %v1592_v61 = vpop.permute.xlu1 %1591 }
0x1615   :  { %2067 = vmatmul.mubr.msk.bf16.vlgmr.msra.gmra.mrb[36].mxu0 %vm164_vm2, %v1592_v61 }
0x16e8   :  { %v1630_v62 = vpop.f32.mrb[36].mxu0 }
0x16e9   :  { %v2085_v63 = vadd.f32 %v2415_v49, %v1630_v62  ;;  %v2068_v1 = vpop.f32.mrb[37].mxu0 }
0x16ea   :  { %v1633_v3 = vpop.f32.mrb[38].mxu0 }
0x16eb   :  { %2256 = vtanh.f32 %v2085_v63  ;;  %v2069_v4 = vpop.f32.mrb[39].mxu0  ;;  %v1783_v39 = vmul.f32 -1.442695, %v2085_v63 }
0x16ed   :  { %2258 = vpow2.f32 %v1783_v39 }
0x16f5   :  { %v2257_v6 = vpop.eup %2256 }
0x16f6   :  { %1646 = vrot.lane.b32.xlu0 %v2257_v6, %s2270_s24 }
0x16f7   :  { %v2259_v9 = vpop.eup %2258 }
0x16f8   :  { %v1640_v10 = vadd.f32 1.0, %v2259_v9 }
0x16fa   :  { %2260 = vrcp.f32 %v1640_v10 }
0x1704   :  { %v2261_v12 = vpop.eup %2260 }
0x1705   :  { %v1644_v15 = vmul.f32 %v2261_v12, %v1470_v5 }
0x1768   :  { %v1647_v13 = vpop.permute.xlu0 %1646 }
0x1769   :  { %v1649_v14 = vmul.f32 %v2261_v12, %v1647_v13 }
0x176b   :  { %1651 = vrot.lane.b32.xlu1 %v1649_v14, %s2271_s25 }
0x17dd   :  { %v1652_v16 = vpop.permute.xlu1 %1651 }
0x17de   :  { %v1654_v49 = vadd.f32 %v1652_v16, %v1644_v15 }
0x17e0   :  { %2262 = vtanh.f32 %v1654_v49 }
0x17ea   :  { %v2263_v19 = vpop.eup %2262 }
0x17eb   :  { %1657 = vrot.lane.b32.xlu0 %v2263_v19, %s2270_s24 }
0x185d   :  { %v1658_v40 = vpop.permute.xlu0 %1657 }
0x185e   :  { %v1660_v30 = vmul.f32 %v2261_v12, %v1658_v40 }
0x1860   :  { %v1661_v20 = vpack.c.bf16 %v1660_v30, %v1660_v30 }
0x1862   :  { %1667 = vrot.lane.b32.xlu1 %v1661_v20, %s2271_s25 }
0x18d4   :  { %v1668_v37 = vpop.permute.xlu1 %1667 }
0x18d5   :  { %2075 = vmatmul.mubr.msk.bf16.vlgmr.msra.gmra.mrb[32].mxu1 %vm164_vm2, %v1668_v37 }
0x19a8   :  { %v1718_v21 = vpop.f32.mrb[32].mxu1 }
0x19a9   :  { %v1719_v31 = vadd.f32 %v1784_v42, %v1718_v21  ;;  %v2076_v22 = vpop.f32.mrb[33].mxu1 }
0x19aa   :  { %v1721_v0 = vpop.f32.mrb[34].mxu1 }
0x19ab   :  { %1724 = vst [vmem:[%s2698_s3] sm:$0xff] %v1719_v31  ;;  %v2077_v23 = vpop.f32.mrb[35].mxu1 }

</bundles_post_ra>
